<compile_context>
chip_gen: v6e
topology: v6e:2x2x1
jax: 0.10.0
libtpu: 0.0.40
codegen_flags: <defaults>
</compile_context>

<pallas_src>
import functools
import math

import jax
import jax.numpy as jnp
from jax.experimental import pallas as pl
from jax.experimental.pallas import tpu as pltpu


def _round_up(x, m):
    return (x + m - 1) // m * m


# ----------------------------- Pallas kernels ------------------------------

def _conv_tanh_pool_kernel(p_ref, w_ref, b_ref, o_ref, *, rp):
    """Fused conv(matmul) + bias + tanh + 2x2 max-pool for one batch element.

    p_ref: (1, 4*Rp, Kp)  im2col patches; 4 pooling-window positions stacked
                          along the M dim (each slab Rp rows, Rp % 8 == 0)
    w_ref: (Kp, OCp)      reshaped, zero-padded conv weight
    b_ref: (1, OCp)       zero-padded bias
    o_ref: (1, Rp, OCp)   pooled output, Rp >= PH*PW pooled positions
    """
    # Single wide MXU pass over all 4 window slabs at once.
    y = jnp.dot(p_ref[0], w_ref[...], preferred_element_type=jnp.float32)
    y = jnp.tanh(y + b_ref[...])
    # 2x2/stride-2 max pool == elementwise max of the 4 slabs (VPU only;
    # slab boundaries are multiples of 8 -> aligned static slices).
    o_ref[0] = jnp.maximum(
        jnp.maximum(y[0 * rp:1 * rp], y[1 * rp:2 * rp]),
        jnp.maximum(y[2 * rp:3 * rp], y[3 * rp:4 * rp]),
    )


def _mlp_kernel(x_ref, w1_ref, b1_ref, w2_ref, b2_ref, w3_ref, b3_ref, o_ref):
    """Fused fc1+tanh -> fc2+tanh -> fc3 on one M-tile; weights stay in VMEM."""
    h = jnp.dot(x_ref[...], w1_ref[...], preferred_element_type=jnp.float32)
    h = jnp.tanh(h + b1_ref[...])
    h = jnp.dot(h, w2_ref[...], preferred_element_type=jnp.float32)
    h = jnp.tanh(h + b2_ref[...])
    y = jnp.dot(h, w3_ref[...], preferred_element_type=jnp.float32)
    o_ref[...] = y + b3_ref[...]


# ------------------------------- wrappers -----------------------------------

def _im2col_pool_order(x, k):
    """im2col with rows grouped by 2x2 pooling-window position.

    x: (N, C, H, W) -> patches (N, 4, PH*PW, C*k*k) where
      patches[n, dy*2+dx, ph*PW+pw, (c*k+ki)*k+kj] = x[n, c, 2*ph+dy+ki, 2*pw+dx+kj]
    """
    N, C, H, W = x.shape
    OH, OW = H - k + 1, W - k + 1
    assert OH % 2 == 0 and OW % 2 == 0, "pooling assumes even conv output dims"
    PH, PW = OH // 2, OW // 2
    slabs = jnp.stack(
        [x[:, :, ki:ki + OH, kj:kj + OW] for ki in range(k) for kj in range(k)],
        axis=0,
    ).reshape(k, k, N, C, PH, 2, PW, 2)
    # dims: 0=ki 1=kj 2=N 3=C 4=PH 5=dy 6=PW 7=dx  ->  (N, dy, dx, PH, PW, C, ki, kj)
    p = jnp.transpose(slabs, (2, 5, 7, 4, 6, 3, 0, 1))
    return p.reshape(N, 4, PH * PW, C * k * k), PH, PW


def conv2d_tanh_pool_pallas(x, w, b):
    """VALID 5x5 conv (stride 1) + bias + tanh + 2x2/2 max pool, fused.

    x: (N, C, H, W)   w: (OC, C, k, k)   b: (OC,)   ->  (N, OC, PH, PW)
    """
    N, C, H, W = x.shape
    OC, C2, k, _ = w.shape
    assert C == C2

    patches, PH, PW = _im2col_pool_order(x, k)       # (N, 4, R, K)
    R = PH * PW
    K = C * k * k
    Rp = _round_up(R, 8)                              # sublane-aligned slabs
    Kp = _round_up(K, 128)                            # lane-dense contraction
    OCp = _round_up(OC, 128)                          # lane-dense output

    patches = jnp.pad(
        patches, ((0, 0), (0, 0), (0, Rp - R), (0, Kp - K))
    ).reshape(N, 4 * Rp, Kp)                          # stack slabs along M
    w2 = jnp.pad(w.reshape(OC, K).T, ((0, Kp - K), (0, OCp - OC)))   # (Kp, OCp)
    b2 = jnp.pad(b.reshape(1, OC), ((0, 0), (0, OCp - OC)))          # (1, OCp)

    cost = pl.CostEstimate(
        flops=2 * N * 4 * Rp * Kp * OCp,
        transcendentals=N * 4 * Rp * OCp,
        bytes_accessed=4 * (N * 4 * Rp * Kp + Kp * OCp + OCp + N * Rp * OCp),
    )

    out = pl.pallas_call(
        functools.partial(_conv_tanh_pool_kernel, rp=Rp),
        out_shape=jax.ShapeDtypeStruct((N, Rp, OCp), jnp.float32),
        grid=(N,),
        in_specs=[
            pl.BlockSpec((1, 4 * Rp, Kp), lambda n: (n, 0, 0)),
            pl.BlockSpec((Kp, OCp), lambda n: (0, 0)),
            pl.BlockSpec((1, OCp), lambda n: (0, 0)),
        ],
        out_specs=pl.BlockSpec((1, Rp, OCp), lambda n: (n, 0, 0)),
        compiler_params=pltpu.CompilerParams(
            dimension_semantics=("parallel",)),
        cost_estimate=cost,
    )(patches, w2, b2)

    y = out[:, :R, :OC].reshape(N, PH, PW, OC)        # slice off padding
    return jnp.transpose(y, (0, 3, 1, 2))             # back to NCHW


def mlp_pallas(x, w1, b1, w2, b2, w3, b3):
    """Fused fc1+tanh -> fc2+tanh -> fc3.  x:(M,K) -> (M, O)."""
    M, K = x.shape
    H1, H2, O = w1.shape[1], w2.shape[1], w3.shape[1]
    Kp = _round_up(K, 128)
    H1p = _round_up(H1, 128)
    H2p = _round_up(H2, 128)
    Op = _round_up(O, 128)

    tile_m = min(256, _round_up(M, 8))
    Mp = _round_up(M, tile_m)

    xp = jnp.pad(x, ((0, Mp - M), (0, Kp - K)))
    w1p = jnp.pad(w1, ((0, Kp - K), (0, H1p - H1)))
    b1p = jnp.pad(b1.reshape(1, H1), ((0, 0), (0, H1p - H1)))
    w2p = jnp.pad(w2, ((0, H1p - H1), (0, H2p - H2)))
    b2p = jnp.pad(b2.reshape(1, H2), ((0, 0), (0, H2p - H2)))
    w3p = jnp.pad(w3, ((0, H2p - H2), (0, Op - O)))
    b3p = jnp.pad(b3.reshape(1, O), ((0, 0), (0, Op - O)))

    cost = pl.CostEstimate(
        flops=2 * Mp * (Kp * H1p + H1p * H2p + H2p * Op),
        transcendentals=Mp * (H1p + H2p),
        bytes_accessed=4 * (Mp * Kp + Kp * H1p + H1p * H2p + H2p * Op
                            + Mp * Op + H1p + H2p + Op),
    )

    out = pl.pallas_call(
        _mlp_kernel,
        out_shape=jax.ShapeDtypeStruct((Mp, Op), jnp.float32),
        grid=(Mp // tile_m,),
        in_specs=[
            pl.BlockSpec((tile_m, Kp), lambda i: (i, 0)),
            pl.BlockSpec((Kp, H1p), lambda i: (0, 0)),
            pl.BlockSpec((1, H1p), lambda i: (0, 0)),
            pl.BlockSpec((H1p, H2p), lambda i: (0, 0)),
            pl.BlockSpec((1, H2p), lambda i: (0, 0)),
            pl.BlockSpec((H2p, Op), lambda i: (0, 0)),
            pl.BlockSpec((1, Op), lambda i: (0, 0)),
        ],
        out_specs=pl.BlockSpec((tile_m, Op), lambda i: (i, 0)),
        compiler_params=pltpu.CompilerParams(
            dimension_semantics=("parallel",)),
        cost_estimate=cost,
    )(xp, w1p, b1p, w2p, b2p, w3p, b3p)

    return out[:M, :O]


# ------------------------------ LeNet5 model -------------------------------

def _uniform(key, shape, bound):
    return jax.random.uniform(key, shape, jnp.float32, -bound, bound)


def init_params(key):
    ks = jax.random.split(key, 10)
    b1 = 1.0 / math.sqrt(3 * 5 * 5)
    b2 = 1.0 / math.sqrt(6 * 5 * 5)
    bf1 = 1.0 / math.sqrt(16 * 5 * 5)
    bf2 = 1.0 / math.sqrt(120)
    bf3 = 1.0 / math.sqrt(84)
    return {
        "w1": _uniform(ks[0], (6, 3, 5, 5), b1),   "b1": _uniform(ks[1], (6,), b1),
        "w2": _uniform(ks[2], (16, 6, 5, 5), b2),  "b2": _uniform(ks[3], (16,), b2),
        "wf1": _uniform(ks[4], (16 * 5 * 5, 120), bf1), "bf1": _uniform(ks[5], (120,), bf1),
        "wf2": _uniform(ks[6], (120, 84), bf2),    "bf2": _uniform(ks[7], (84,), bf2),
        "wf3": _uniform(ks[8], (84, 10), bf3),     "bf3": _uniform(ks[9], (10,), bf3),
    }


@jax.jit
def lenet5_forward(params, x):
    # x: (N, 3, 32, 32) NCHW float32
    x = conv2d_tanh_pool_pallas(x, params["w1"], params["b1"])   # (N, 6, 14, 14)
    x = conv2d_tanh_pool_pallas(x, params["w2"], params["b2"])   # (N, 16, 5, 5)
    x = x.reshape(x.shape[0], 16 * 5 * 5)                        # (N, 400)
    x = mlp_pallas(x, params["wf1"], params["bf1"],
                   params["wf2"], params["bf2"],
                   params["wf3"], params["bf3"])                 # (N, 10)
    return x


def lenet5_reference(params, x):
    """Pure-JAX reference (no Pallas) for a sanity check."""
    def conv(x, w, b):
        y = jax.lax.conv_general_dilated(
            x, w, (1, 1), "VALID", dimension_numbers=("NCHW", "OIHW", "NCHW"))
        return jnp.tanh(y + b[None, :, None, None])

    def pool(x):
        return jax.lax.reduce_window(
            x, -jnp.inf, jax.lax.max, (1, 1, 2, 2), (1, 1, 2, 2), "VALID")

    x = pool(conv(x, params["w1"], params["b1"]))
    x = pool(conv(x, params["w2"], params["b2"]))
    x = x.reshape(x.shape[0], -1)
    x = jnp.tanh(x @ params["wf1"] + params["bf1"])
    x = jnp.tanh(x @ params["wf2"] + params["bf2"])
    return x @ params["wf3"] + params["bf3"]


if __name__ == "__main__":
    key = jax.random.PRNGKey(0)
    pkey, xkey = jax.random.split(key)
    params = init_params(pkey)
    # LeNet5 requires 32x32 RGB inputs for the 16*5*5 flatten to hold.
    x = jax.random.normal(xkey, (2, 3, 32, 32), dtype=jnp.float32)

    out = jax.block_until_ready(lenet5_forward(params, x))
    assert out.shape == (2, 10), out.shape

    ref = lenet5_reference(params, x)
    # Tolerance kept from the previously-validated f32 run; the padded /
    # fused path is numerically identical modulo matmul pass ordering.
    assert jnp.allclose(out, ref, atol=5e-2, rtol=5e-2), (
        float(jnp.max(jnp.abs(out - ref))))

    print("KERNEL_OK")
</pallas_src>

<mosaic_0001>
module attributes {stable_mosaic.version = 11 : i64} {
  func.func @_conv_tanh_pool_kernel(%arg0: i32, %arg1: memref<1x800x128xf32, #tpu.memory_space<vmem>>, %arg2: memref<128x128xf32, #tpu.memory_space<vmem>>, %arg3: memref<1x128xf32, #tpu.memory_space<vmem>>, %arg4: memref<1x200x128xf32, #tpu.memory_space<vmem>>) attributes {dimension_semantics = [#tpu.dimension_semantics<parallel>], iteration_bounds = array<i64: 2>, scalar_prefetch = 0 : i64, scratch_operands = 0 : i64, tpu.core_type = #tpu.core_type<tc>, window_params = [{transform_indices = @transform_0, window_bounds = array<i64: 1, 800, 128>}, {pipeline_mode = #tpu.pipeline_mode<synchronous>, transform_indices = @transform_1, window_bounds = array<i64: 128, 128>}, {pipeline_mode = #tpu.pipeline_mode<synchronous>, transform_indices = @transform_2, window_bounds = array<i64: 1, 128>}, {transform_indices = @transform_3, window_bounds = array<i64: 1, 200, 128>}]} {
    %c0 = arith.constant 0 : index
    %c0_0 = arith.constant 0 : index
    %c0_1 = arith.constant 0 : index
    %0 = vector.load %arg1[%c0, %c0_0, %c0_1] : memref<1x800x128xf32, #tpu.memory_space<vmem>>, vector<1x800x128xf32>
    %1 = vector.shape_cast %0 : vector<1x800x128xf32> to vector<800x128xf32>
    %c0_2 = arith.constant 0 : index
    %c0_3 = arith.constant 0 : index
    %2 = vector.load %arg2[%c0_2, %c0_3] : memref<128x128xf32, #tpu.memory_space<vmem>>, vector<128x128xf32>
    %cst = arith.constant dense<0.000000e+00> : vector<800x128xf32>
    %3 = tpu.matmul %1, %2, %cst {dimension_numbers = #tpu.dot_dimension_numbers<[1], [0], [0], [1], [0, 0, 1, 1], [], []>} : vector<800x128xf32>, vector<128x128xf32>, vector<800x128xf32> -> vector<800x128xf32>
    %c0_4 = arith.constant 0 : index
    %c0_5 = arith.constant 0 : index
    %4 = vector.load %arg3[%c0_4, %c0_5] : memref<1x128xf32, #tpu.memory_space<vmem>>, vector<1x128xf32>
    %5 = vector.broadcast %4 : vector<1x128xf32> to vector<800x128xf32>
    %6 = arith.addf %3, %5 : vector<800x128xf32>
    %7 = math.tanh %6 : vector<800x128xf32>
    %8 = vector.extract_strided_slice %7 {offsets = [0, 0], sizes = [200, 128], strides = [1, 1]} : vector<800x128xf32> to vector<200x128xf32>
    %9 = vector.extract_strided_slice %7 {offsets = [200, 0], sizes = [200, 128], strides = [1, 1]} : vector<800x128xf32> to vector<200x128xf32>
    %10 = arith.maximumf %8, %9 : vector<200x128xf32>
    %11 = vector.extract_strided_slice %7 {offsets = [400, 0], sizes = [200, 128], strides = [1, 1]} : vector<800x128xf32> to vector<200x128xf32>
    %12 = vector.extract_strided_slice %7 {offsets = [600, 0], sizes = [200, 128], strides = [1, 1]} : vector<800x128xf32> to vector<200x128xf32>
    %13 = arith.maximumf %11, %12 : vector<200x128xf32>
    %14 = arith.maximumf %10, %13 : vector<200x128xf32>
    %c0_6 = arith.constant 0 : index
    %c0_7 = arith.constant 0 : index
    %c0_8 = arith.constant 0 : index
    %15 = vector.load %arg4[%c0_6, %c0_7, %c0_8] : memref<1x200x128xf32, #tpu.memory_space<vmem>>, vector<1x200x128xf32>
    %16 = vector.shape_cast %15 : vector<1x200x128xf32> to vector<200x128xf32>
    %17 = vector.shape_cast %14 : vector<200x128xf32> to vector<1x200x128xf32>
    tpu.vector_store %arg4[%c0_6, %c0_7, %c0_8], %17 {strides = array<i32>} : memref<1x200x128xf32, #tpu.memory_space<vmem>>, vector<1x200x128xf32>,
    return
  }
  func.func @transform_0(%arg0: i32) -> (i32, i32, i32) {
    %c0_i32 = arith.constant 0 : i32
    %c0_i32_0 = arith.constant 0 : i32
    %c0_i32_1 = arith.constant 0 : i32
    return %arg0, %c0_i32, %c0_i32_0 : i32, i32, i32
  }
  func.func @transform_1(%arg0: i32) -> (i32, i32) {
    %c0_i32 = arith.constant 0 : i32
    %c0_i32_0 = arith.constant 0 : i32
    %c0_i32_1 = arith.constant 0 : i32
    return %c0_i32, %c0_i32_0 : i32, i32
  }
  func.func @transform_2(%arg0: i32) -> (i32, i32) {
    %c0_i32 = arith.constant 0 : i32
    %c0_i32_0 = arith.constant 0 : i32
    %c0_i32_1 = arith.constant 0 : i32
    return %c0_i32, %c0_i32_0 : i32, i32
  }
  func.func @transform_3(%arg0: i32) -> (i32, i32, i32) {
    %c0_i32 = arith.constant 0 : i32
    %c0_i32_0 = arith.constant 0 : i32
    %c0_i32_1 = arith.constant 0 : i32
    return %arg0, %c0_i32, %c0_i32_0 : i32, i32, i32
  }
}

module attributes {stable_mosaic.version = 11 : i64} {
  func.func @_conv_tanh_pool_kernel(%arg0: i32, %arg1: memref<1x128x256xf32, #tpu.memory_space<vmem>>, %arg2: memref<256x128xf32, #tpu.memory_space<vmem>>, %arg3: memref<1x128xf32, #tpu.memory_space<vmem>>, %arg4: memref<1x32x128xf32, #tpu.memory_space<vmem>>) attributes {dimension_semantics = [#tpu.dimension_semantics<parallel>], iteration_bounds = array<i64: 2>, scalar_prefetch = 0 : i64, scratch_operands = 0 : i64, tpu.core_type = #tpu.core_type<tc>, window_params = [{transform_indices = @transform_0, window_bounds = array<i64: 1, 128, 256>}, {pipeline_mode = #tpu.pipeline_mode<synchronous>, transform_indices = @transform_1, window_bounds = array<i64: 256, 128>}, {pipeline_mode = #tpu.pipeline_mode<synchronous>, transform_indices = @transform_2, window_bounds = array<i64: 1, 128>}, {transform_indices = @transform_3, window_bounds = array<i64: 1, 32, 128>}]} {
    %c0 = arith.constant 0 : index
    %c0_0 = arith.constant 0 : index
    %c0_1 = arith.constant 0 : index
    %0 = vector.load %arg1[%c0, %c0_0, %c0_1] : memref<1x128x256xf32, #tpu.memory_space<vmem>>, vector<1x128x256xf32>
    %1 = vector.shape_cast %0 : vector<1x128x256xf32> to vector<128x256xf32>
    %c0_2 = arith.constant 0 : index
    %c0_3 = arith.constant 0 : index
    %2 = vector.load %arg2[%c0_2, %c0_3] : memref<256x128xf32, #tpu.memory_space<vmem>>, vector<256x128xf32>
    %cst = arith.constant dense<0.000000e+00> : vector<128x128xf32>
    %3 = tpu.matmul %1, %2, %cst {dimension_numbers = #tpu.dot_dimension_numbers<[1], [0], [0], [1], [0, 0, 1, 1], [], []>} : vector<128x256xf32>, vector<256x128xf32>, vector<128x128xf32> -> vector<128x128xf32>
    %c0_4 = arith.constant 0 : index
    %c0_5 = arith.constant 0 : index
    %4 = vector.load %arg3[%c0_4, %c0_5] : memref<1x128xf32, #tpu.memory_space<vmem>>, vector<1x128xf32>
    %5 = vector.broadcast %4 : vector<1x128xf32> to vector<128x128xf32>
    %6 = arith.addf %3, %5 : vector<128x128xf32>
    %7 = math.tanh %6 : vector<128x128xf32>
    %8 = vector.extract_strided_slice %7 {offsets = [0, 0], sizes = [32, 128], strides = [1, 1]} : vector<128x128xf32> to vector<32x128xf32>
    %9 = vector.extract_strided_slice %7 {offsets = [32, 0], sizes = [32, 128], strides = [1, 1]} : vector<128x128xf32> to vector<32x128xf32>
    %10 = arith.maximumf %8, %9 : vector<32x128xf32>
    %11 = vector.extract_strided_slice %7 {offsets = [64, 0], sizes = [32, 128], strides = [1, 1]} : vector<128x128xf32> to vector<32x128xf32>
    %12 = vector.extract_strided_slice %7 {offsets = [96, 0], sizes = [32, 128], strides = [1, 1]} : vector<128x128xf32> to vector<32x128xf32>
    %13 = arith.maximumf %11, %12 : vector<32x128xf32>
    %14 = arith.maximumf %10, %13 : vector<32x128xf32>
    %c0_6 = arith.constant 0 : index
    %c0_7 = arith.constant 0 : index
    %c0_8 = arith.constant 0 : index
    %15 = vector.load %arg4[%c0_6, %c0_7, %c0_8] : memref<1x32x128xf32, #tpu.memory_space<vmem>>, vector<1x32x128xf32>
    %16 = vector.shape_cast %15 : vector<1x32x128xf32> to vector<32x128xf32>
    %17 = vector.shape_cast %14 : vector<32x128xf32> to vector<1x32x128xf32>
    tpu.vector_store %arg4[%c0_6, %c0_7, %c0_8], %17 {strides = array<i32>} : memref<1x32x128xf32, #tpu.memory_space<vmem>>, vector<1x32x128xf32>,
    return
  }
  func.func @transform_0(%arg0: i32) -> (i32, i32, i32) {
    %c0_i32 = arith.constant 0 : i32
    %c0_i32_0 = arith.constant 0 : i32
    %c0_i32_1 = arith.constant 0 : i32
    return %arg0, %c0_i32, %c0_i32_0 : i32, i32, i32
  }
  func.func @transform_1(%arg0: i32) -> (i32, i32) {
    %c0_i32 = arith.constant 0 : i32
    %c0_i32_0 = arith.constant 0 : i32
    %c0_i32_1 = arith.constant 0 : i32
    return %c0_i32, %c0_i32_0 : i32, i32
  }
  func.func @transform_2(%arg0: i32) -> (i32, i32) {
    %c0_i32 = arith.constant 0 : i32
    %c0_i32_0 = arith.constant 0 : i32
    %c0_i32_1 = arith.constant 0 : i32
    return %c0_i32, %c0_i32_0 : i32, i32
  }
  func.func @transform_3(%arg0: i32) -> (i32, i32, i32) {
    %c0_i32 = arith.constant 0 : i32
    %c0_i32_0 = arith.constant 0 : i32
    %c0_i32_1 = arith.constant 0 : i32
    return %arg0, %c0_i32, %c0_i32_0 : i32, i32, i32
  }
}

module attributes {stable_mosaic.version = 11 : i64} {
  func.func @_mlp_kernel(%arg0: i32, %arg1: memref<8x512xf32, #tpu.memory_space<vmem>>, %arg2: memref<512x128xf32, #tpu.memory_space<vmem>>, %arg3: memref<1x128xf32, #tpu.memory_space<vmem>>, %arg4: memref<128x128xf32, #tpu.memory_space<vmem>>, %arg5: memref<1x128xf32, #tpu.memory_space<vmem>>, %arg6: memref<128x128xf32, #tpu.memory_space<vmem>>, %arg7: memref<1x128xf32, #tpu.memory_space<vmem>>, %arg8: memref<8x128xf32, #tpu.memory_space<vmem>>) attributes {dimension_semantics = [#tpu.dimension_semantics<parallel>], iteration_bounds = array<i64: 1>, scalar_prefetch = 0 : i64, scratch_operands = 0 : i64, tpu.core_type = #tpu.core_type<tc>, window_params = [{transform_indices = @transform_0, window_bounds = array<i64: 8, 512>}, {pipeline_mode = #tpu.pipeline_mode<synchronous>, transform_indices = @transform_1, window_bounds = array<i64: 512, 128>}, {pipeline_mode = #tpu.pipeline_mode<synchronous>, transform_indices = @transform_2, window_bounds = array<i64: 1, 128>}, {pipeline_mode = #tpu.pipeline_mode<synchronous>, transform_indices = @transform_3, window_bounds = array<i64: 128, 128>}, {pipeline_mode = #tpu.pipeline_mode<synchronous>, transform_indices = @transform_4, window_bounds = array<i64: 1, 128>}, {pipeline_mode = #tpu.pipeline_mode<synchronous>, transform_indices = @transform_5, window_bounds = array<i64: 128, 128>}, {pipeline_mode = #tpu.pipeline_mode<synchronous>, transform_indices = @transform_6, window_bounds = array<i64: 1, 128>}, {transform_indices = @transform_7, window_bounds = array<i64: 8, 128>}]} {
    %c0 = arith.constant 0 : index
    %c0_0 = arith.constant 0 : index
    %0 = vector.load %arg1[%c0, %c0_0] : memref<8x512xf32, #tpu.memory_space<vmem>>, vector<8x512xf32>
    %c0_1 = arith.constant 0 : index
    %c0_2 = arith.constant 0 : index
    %1 = vector.load %arg2[%c0_1, %c0_2] : memref<512x128xf32, #tpu.memory_space<vmem>>, vector<512x128xf32>
    %cst = arith.constant dense<0.000000e+00> : vector<8x128xf32>
    %2 = tpu.matmul %0, %1, %cst {dimension_numbers = #tpu.dot_dimension_numbers<[1], [0], [0], [1], [0, 0, 1, 1], [], []>} : vector<8x512xf32>, vector<512x128xf32>, vector<8x128xf32> -> vector<8x128xf32>
    %c0_3 = arith.constant 0 : index
    %c0_4 = arith.constant 0 : index
    %3 = vector.load %arg3[%c0_3, %c0_4] : memref<1x128xf32, #tpu.memory_space<vmem>>, vector<1x128xf32>
    %4 = vector.broadcast %3 : vector<1x128xf32> to vector<8x128xf32>
    %5 = arith.addf %2, %4 : vector<8x128xf32>
    %6 = math.tanh %5 : vector<8x128xf32>
    %c0_5 = arith.constant 0 : index
    %c0_6 = arith.constant 0 : index
    %7 = vector.load %arg4[%c0_5, %c0_6] : memref<128x128xf32, #tpu.memory_space<vmem>>, vector<128x128xf32>
    %cst_7 = arith.constant dense<0.000000e+00> : vector<8x128xf32>
    %8 = tpu.matmul %6, %7, %cst_7 {dimension_numbers = #tpu.dot_dimension_numbers<[1], [0], [0], [1], [0, 0, 1, 1], [], []>} : vector<8x128xf32>, vector<128x128xf32>, vector<8x128xf32> -> vector<8x128xf32>
    %c0_8 = arith.constant 0 : index
    %c0_9 = arith.constant 0 : index
    %9 = vector.load %arg5[%c0_8, %c0_9] : memref<1x128xf32, #tpu.memory_space<vmem>>, vector<1x128xf32>
    %10 = vector.broadcast %9 : vector<1x128xf32> to vector<8x128xf32>
    %11 = arith.addf %8, %10 : vector<8x128xf32>
    %12 = math.tanh %11 : vector<8x128xf32>
    %c0_10 = arith.constant 0 : index
    %c0_11 = arith.constant 0 : index
    %13 = vector.load %arg6[%c0_10, %c0_11] : memref<128x128xf32, #tpu.memory_space<vmem>>, vector<128x128xf32>
    %cst_12 = arith.constant dense<0.000000e+00> : vector<8x128xf32>
    %14 = tpu.matmul %12, %13, %cst_12 {dimension_numbers = #tpu.dot_dimension_numbers<[1], [0], [0], [1], [0, 0, 1, 1], [], []>} : vector<8x128xf32>, vector<128x128xf32>, vector<8x128xf32> -> vector<8x128xf32>
    %c0_13 = arith.constant 0 : index
    %c0_14 = arith.constant 0 : index
    %15 = vector.load %arg7[%c0_13, %c0_14] : memref<1x128xf32, #tpu.memory_space<vmem>>, vector<1x128xf32>
    %16 = vector.broadcast %15 : vector<1x128xf32> to vector<8x128xf32>
    %17 = arith.addf %14, %16 : vector<8x128xf32>
    %c0_15 = arith.constant 0 : index
    %c0_16 = arith.constant 0 : index
    %18 = vector.load %arg8[%c0_15, %c0_16] : memref<8x128xf32, #tpu.memory_space<vmem>>, vector<8x128xf32>
    tpu.vector_store %arg8[%c0_15, %c0_16], %17 {strides = array<i32>} : memref<8x128xf32, #tpu.memory_space<vmem>>, vector<8x128xf32>,
    return
  }
  func.func @transform_0(%arg0: i32) -> (i32, i32) {
    %c0_i32 = arith.constant 0 : i32
    %c0_i32_0 = arith.constant 0 : i32
    return %arg0, %c0_i32 : i32, i32
  }
  func.func @transform_1(%arg0: i32) -> (i32, i32) {
    %c0_i32 = arith.constant 0 : i32
    %c0_i32_0 = arith.constant 0 : i32
    %c0_i32_1 = arith.constant 0 : i32
    return %c0_i32, %c0_i32_0 : i32, i32
  }
  func.func @transform_2(%arg0: i32) -> (i32, i32) {
    %c0_i32 = arith.constant 0 : i32
    %c0_i32_0 = arith.constant 0 : i32
    %c0_i32_1 = arith.constant 0 : i32
    return %c0_i32, %c0_i32_0 : i32, i32
  }
  func.func @transform_3(%arg0: i32) -> (i32, i32) {
    %c0_i32 = arith.constant 0 : i32
    %c0_i32_0 = arith.constant 0 : i32
    %c0_i32_1 = arith.constant 0 : i32
    return %c0_i32, %c0_i32_0 : i32, i32
  }
  func.func @transform_4(%arg0: i32) -> (i32, i32) {
    %c0_i32 = arith.constant 0 : i32
    %c0_i32_0 = arith.constant 0 : i32
    %c0_i32_1 = arith.constant 0 : i32
    return %c0_i32, %c0_i32_0 : i32, i32
  }
  func.func @transform_5(%arg0: i32) -> (i32, i32) {
    %c0_i32 = arith.constant 0 : i32
    %c0_i32_0 = arith.constant 0 : i32
    %c0_i32_1 = arith.constant 0 : i32
    return %c0_i32, %c0_i32_0 : i32, i32
  }
  func.func @transform_6(%arg0: i32) -> (i32, i32) {
    %c0_i32 = arith.constant 0 : i32
    %c0_i32_0 = arith.constant 0 : i32
    %c0_i32_1 = arith.constant 0 : i32
    return %c0_i32, %c0_i32_0 : i32, i32
  }
  func.func @transform_7(%arg0: i32) -> (i32, i32) {
    %c0_i32 = arith.constant 0 : i32
    %c0_i32_0 = arith.constant 0 : i32
    return %arg0, %c0_i32 : i32, i32
  }
}

</mosaic_0001>

<bundles_post_ra>
// kernel: lenet5_forward.3
= control target key start
LH: loop header
LB: loop body
LE: loop exit
PB: predicated region body
PF: predicated region fallthrough
CT: control target
= control target key end

     0   :  { %s1692_s12 = smov 0   ;;  %s2149_s0 = inlined_call_operand.vmem [shape: f32[2,800,128], index: 0, kind: input, shape index: {}]   ;;  %s2150_s1 = inlined_call_operand.vmem [shape: f32[128,128], index: 1, kind: input, shape index: {}]   ;;  %s2151_s2 = inlined_call_operand.vmem [shape: f32[1,128], index: 2, kind: input, shape index: {}]   ;;  %s2152_s3 = inlined_call_operand.vmem [shape: f32[2,200,128], index: 3, kind: output, shape index: {}]  }
   0x1 LB: > { %s1114_s13 = sadd.s32 4294967295, %s1670_s12   ;;  %p1118_p0 = scmp.ge.s32.totalorder %s1670_s12, 1  ;;  %s1670_s12 = sphi %s1692_s12, %s13_s12  }
   0x2   : > { %p137_p1 = scmp.lt.s32.totalorder %s1670_s12, 3 }
   0x4   : > { %p138_p2 = pnand %p1118_p0, %p137_p1 }
   0x6   : > { %141 = sbr.rel (%p138_p2) target bundleno = 358 (0x166), region = 32 }
   0xb   : > { %v286_v0 = vld [vmem:[%s2150_s1 + $0x78] sm:$0xff]  ;;  %v285_v1 = vld [vmem:[%s2150_s1 + $0x70] sm:$0xff]  ;;  %v284_v2 = vld [vmem:[%s2150_s1 + $0x68] sm:$0xff]  ;;  %p161_p3 = scmp.lt.s32.totalorder %s1114_s13, 1 }
   0xc   : > { %1240 = vmatprep.subr.mxu0 %v286_v0  ;;  %1422 = vmatprep.subr.mxu1 %v286_v0  ;;  %v283_v3 = vld [vmem:[%s2150_s1 + $0x60] sm:$0xff]  ;;  %v282_v4 = vld [vmem:[%s2150_s1 + $0x58] sm:$0xff]  ;;  %v281_v5 = vld [vmem:[%s2150_s1 + $0x50] sm:$0xff] }
   0xd   : > { %1241 = vmatpush3.msra.mxu0 %v286_v0  ;;  %1438 = vmatpush3.msra.mxu1 %v286_v0  ;;  %v280_v6 = vld [vmem:[%s2150_s1 + $0x48] sm:$0xff]  ;;  %v279_v7 = vld [vmem:[%s2150_s1 + $0x40] sm:$0xff]  ;;  %v278_v8 = vld [vmem:[%s2150_s1 + $0x38] sm:$0xff]  ;;  %s2160_s13 = smov (!%p161_p3, %s1114_s13), 1 }
   0xe   : > { %1242 = vmatprep.subr.mxu0 %v285_v1  ;;  %1423 = vmatprep.subr.mxu1 %v285_v1  ;;  %v277_v9 = vld [vmem:[%s2150_s1 + $0x30] sm:$0xff]  ;;  %v276_v10 = vld [vmem:[%s2150_s1 + $0x28] sm:$0xff]  ;;  %v275_v11 = vld [vmem:[%s2150_s1 + $0x20] sm:$0xff]  ;;  %s1454_s15 = smul.u32 800, %s2160_s13 }
   0xf   : > { %1243 = vmatpush3.msra.mxu0 %v285_v1  ;;  %1439 = vmatpush3.msra.mxu1 %v285_v1  ;;  %v274_v12 = vld [vmem:[%s2150_s1 + $0x18] sm:$0xff]  ;;  %v273_v13 = vld [vmem:[%s2150_s1 + $0x10] sm:$0xff]  ;;  %v272_v14 = vld [vmem:[%s2150_s1 + $0x8] sm:$0xff]  ;;  %s1455_s27 = smul.u32 200, %s2160_s13 }
  0x10   : > { %1244 = vmatprep.subr.mxu0 %v284_v2  ;;  %1424 = vmatprep.subr.mxu1 %v284_v2  ;;  %s1755_s22 = scalar_lea.vmem %s2149_s0, %s1454_s15  ;;  %v271_v15 = vld [vmem:[%s2150_s1] sm:$0xff] }
  0x11   : > { %1245 = vmatpush3.msra.mxu0 %v284_v2  ;;  %1440 = vmatpush3.msra.mxu1 %v284_v2  ;;  %v171_v16 = vld [vmem:[%s1755_s22] sm:$0xff]  ;;  %v221_v17 = vld [vmem:[%s1755_s22 + $0x190] sm:$0xff]  ;;  %v172_v18 = vld [vmem:[%s1755_s22 + $0x8] sm:$0xff]  ;;  %s2037_s29 = scalar_lea.vmem %s2152_s3, %s1455_s27 }
  0x12   : > { %1246 = vmatprep.subr.mxu0 %v283_v3  ;;  %1425 = vmatprep.subr.mxu1 %v283_v3  ;;  %v222_v19 = vld [vmem:[%s1755_s22 + $0x198] sm:$0xff]  ;;  %v173_v20 = vld [vmem:[%s1755_s22 + $0x10] sm:$0xff]  ;;  %v223_v21 = vld [vmem:[%s1755_s22 + $0x1a0] sm:$0xff] }
  0x13   : > { %1247 = vmatpush3.msra.mxu0 %v283_v3  ;;  %1441 = vmatpush3.msra.mxu1 %v283_v3  ;;  %v174_v22 = vld [vmem:[%s1755_s22 + $0x18] sm:$0xff]  ;;  %v224_v23 = vld [vmem:[%s1755_s22 + $0x1a8] sm:$0xff]  ;;  %v175_v24 = vld [vmem:[%s1755_s22 + $0x20] sm:$0xff] }
  0x14   : > { %1248 = vmatprep.subr.mxu0 %v282_v4  ;;  %1426 = vmatprep.subr.mxu1 %v282_v4  ;;  %v225_v25 = vld [vmem:[%s1755_s22 + $0x1b0] sm:$0xff]  ;;  %v176_v26 = vld [vmem:[%s1755_s22 + $0x28] sm:$0xff]  ;;  %v226_v27 = vld [vmem:[%s1755_s22 + $0x1b8] sm:$0xff] }
  0x15   : > { %1249 = vmatpush3.msra.mxu0 %v282_v4  ;;  %1442 = vmatpush3.msra.mxu1 %v282_v4  ;;  %v177_v28 = vld [vmem:[%s1755_s22 + $0x30] sm:$0xff]  ;;  %v227_v29 = vld [vmem:[%s1755_s22 + $0x1c0] sm:$0xff]  ;;  %v178_v30 = vld [vmem:[%s1755_s22 + $0x38] sm:$0xff] }
  0x16   : > { %1250 = vmatprep.subr.mxu0 %v281_v5  ;;  %1427 = vmatprep.subr.mxu1 %v281_v5  ;;  %v228_v31 = vld [vmem:[%s1755_s22 + $0x1c8] sm:$0xff]  ;;  %v179_v32 = vld [vmem:[%s1755_s22 + $0x40] sm:$0xff]  ;;  %v229_v33 = vld [vmem:[%s1755_s22 + $0x1d0] sm:$0xff] }
  0x17   : > { %1251 = vmatpush3.msra.mxu0 %v281_v5  ;;  %1443 = vmatpush3.msra.mxu1 %v281_v5  ;;  %v180_v34 = vld [vmem:[%s1755_s22 + $0x48] sm:$0xff]  ;;  %v230_v35 = vld [vmem:[%s1755_s22 + $0x1d8] sm:$0xff]  ;;  %v181_v36 = vld [vmem:[%s1755_s22 + $0x50] sm:$0xff] }
  0x18   : > { %1252 = vmatprep.subr.mxu0 %v280_v6  ;;  %1428 = vmatprep.subr.mxu1 %v280_v6  ;;  %v231_v37 = vld [vmem:[%s1755_s22 + $0x1e0] sm:$0xff]  ;;  %v182_v38 = vld [vmem:[%s1755_s22 + $0x58] sm:$0xff]  ;;  %v232_v39 = vld [vmem:[%s1755_s22 + $0x1e8] sm:$0xff] }
  0x19   : > { %1253 = vmatpush3.msra.mxu0 %v280_v6  ;;  %1444 = vmatpush3.msra.mxu1 %v280_v6  ;;  %v183_v40 = vld [vmem:[%s1755_s22 + $0x60] sm:$0xff]  ;;  %v233_v41 = vld [vmem:[%s1755_s22 + $0x1f0] sm:$0xff]  ;;  %v184_v42 = vld [vmem:[%s1755_s22 + $0x68] sm:$0xff] }
  0x1a   : > { %1254 = vmatprep.subr.mxu0 %v279_v7  ;;  %1429 = vmatprep.subr.mxu1 %v279_v7  ;;  %v234_v43 = vld [vmem:[%s1755_s22 + $0x1f8] sm:$0xff]  ;;  %v185_v44 = vld [vmem:[%s1755_s22 + $0x70] sm:$0xff]  ;;  %v235_v45 = vld [vmem:[%s1755_s22 + $0x200] sm:$0xff] }
  0x1b   : > { %1255 = vmatpush3.msra.mxu0 %v279_v7  ;;  %1445 = vmatpush3.msra.mxu1 %v279_v7  ;;  %v186_v46 = vld [vmem:[%s1755_s22 + $0x78] sm:$0xff]  ;;  %v236_v47 = vld [vmem:[%s1755_s22 + $0x208] sm:$0xff]  ;;  %v187_v48 = vld [vmem:[%s1755_s22 + $0x80] sm:$0xff] }
  0x1c   : > { %1256 = vmatprep.subr.mxu0 %v278_v8  ;;  %1430 = vmatprep.subr.mxu1 %v278_v8  ;;  %v237_v49 = vld [vmem:[%s1755_s22 + $0x210] sm:$0xff]  ;;  %v188_v50 = vld [vmem:[%s1755_s22 + $0x88] sm:$0xff]  ;;  %v238_v51 = vld [vmem:[%s1755_s22 + $0x218] sm:$0xff] }
  0x1d   : > { %1257 = vmatpush3.msra.mxu0 %v278_v8  ;;  %1446 = vmatpush3.msra.mxu1 %v278_v8  ;;  %v189_v52 = vld [vmem:[%s1755_s22 + $0x90] sm:$0xff]  ;;  %v239_v53 = vld [vmem:[%s1755_s22 + $0x220] sm:$0xff]  ;;  %v190_v54 = vld [vmem:[%s1755_s22 + $0x98] sm:$0xff] }
  0x1e   : > { %1258 = vmatprep.subr.mxu0 %v277_v9  ;;  %1431 = vmatprep.subr.mxu1 %v277_v9  ;;  %v240_v55 = vld [vmem:[%s1755_s22 + $0x228] sm:$0xff]  ;;  %v191_v56 = vld [vmem:[%s1755_s22 + $0xa0] sm:$0xff]  ;;  %v241_v57 = vld [vmem:[%s1755_s22 + $0x230] sm:$0xff] }
  0x1f   : > { %1259 = vmatpush3.msra.mxu0 %v277_v9  ;;  %1447 = vmatpush3.msra.mxu1 %v277_v9  ;;  %v192_v58 = vld [vmem:[%s1755_s22 + $0xa8] sm:$0xff]  ;;  %v242_v59 = vld [vmem:[%s1755_s22 + $0x238] sm:$0xff]  ;;  %v193_v60 = vld [vmem:[%s1755_s22 + $0xb0] sm:$0xff] }
  0x20   : > { %1260 = vmatprep.subr.mxu0 %v276_v10  ;;  %1432 = vmatprep.subr.mxu1 %v276_v10  ;;  %v243_v61 = vld [vmem:[%s1755_s22 + $0x240] sm:$0xff]  ;;  %v194_v62 = vld [vmem:[%s1755_s22 + $0xb8] sm:$0xff]  ;;  %v244_v63 = vld [vmem:[%s1755_s22 + $0x248] sm:$0xff] }
  0x21   : > { %1261 = vmatpush3.msra.mxu0 %v276_v10  ;;  %1448 = vmatpush3.msra.mxu1 %v276_v10  ;;  %v195_v0 = vld [vmem:[%s1755_s22 + $0xc0] sm:$0xff]  ;;  %v245_v1 = vld [vmem:[%s1755_s22 + $0x250] sm:$0xff]  ;;  %v196_v2 = vld [vmem:[%s1755_s22 + $0xc8] sm:$0xff] }
  0x22   : > { %1262 = vmatprep.subr.mxu0 %v275_v11  ;;  %1433 = vmatprep.subr.mxu1 %v275_v11  ;;  %v246_v3 = vld [vmem:[%s1755_s22 + $0x258] sm:$0xff]  ;;  %v197_v4 = vld [vmem:[%s1755_s22 + $0xd0] sm:$0xff]  ;;  %v247_v5 = vld [vmem:[%s1755_s22 + $0x260] sm:$0xff] }
  0x23   : > { %1263 = vmatpush3.msra.mxu0 %v275_v11  ;;  %1449 = vmatpush3.msra.mxu1 %v275_v11  ;;  %v198_v6 = vld [vmem:[%s1755_s22 + $0xd8] sm:$0xff]  ;;  %v248_v7 = vld [vmem:[%s1755_s22 + $0x268] sm:$0xff]  ;;  %v199_v8 = vld [vmem:[%s1755_s22 + $0xe0] sm:$0xff] }
  0x24   : > { %1264 = vmatprep.subr.mxu0 %v274_v12  ;;  %1434 = vmatprep.subr.mxu1 %v274_v12  ;;  %v249_v9 = vld [vmem:[%s1755_s22 + $0x270] sm:$0xff]  ;;  %v200_v10 = vld [vmem:[%s1755_s22 + $0xe8] sm:$0xff]  ;;  %v250_v11 = vld [vmem:[%s1755_s22 + $0x278] sm:$0xff] }
  0x25   : > { %1265 = vmatpush3.msra.mxu0 %v274_v12  ;;  %1450 = vmatpush3.msra.mxu1 %v274_v12  ;;  %v201_v12 = vld [vmem:[%s1755_s22 + $0xf0] sm:$0xff] }
  0x26   : > { %1266 = vmatprep.subr.mxu0 %v273_v13  ;;  %1435 = vmatprep.subr.mxu1 %v273_v13 }
  0x27   : > { %1267 = vmatpush3.msra.mxu0 %v273_v13  ;;  %1451 = vmatpush3.msra.mxu1 %v273_v13  ;;  %v251_v13 = vld [vmem:[%s1755_s22 + $0x280] sm:$0xff] }
  0x28   : > { %1268 = vmatprep.subr.mxu0 %v272_v14  ;;  %1436 = vmatprep.subr.mxu1 %v272_v14 }
  0x29   : > { %1269 = vmatpush3.msra.mxu0 %v272_v14  ;;  %1452 = vmatpush3.msra.mxu1 %v272_v14  ;;  %v202_v14 = vld [vmem:[%s1755_s22 + $0xf8] sm:$0xff] }
  0x2a   : > { %1270 = vmatprep.subr.mxu0 %v271_v15  ;;  %1437 = vmatprep.subr.mxu1 %v271_v15 }
  0x2b   : > { %1271 = vmatpush3.msra.mxu0 %v271_v15  ;;  %1453 = vmatpush3.msra.mxu1 %v271_v15  ;;  %v252_v15 = vld [vmem:[%s1755_s22 + $0x288] sm:$0xff] }
  0x2c   : > { %1272 = vmatprep.mubr.f32.mxu0 %v171_v16  ;;  %1347 = vmatprep.mubr.f32.mxu1 %v221_v17  ;;  %v203_v16 = vld [vmem:[%s1755_s22 + $0x100] sm:$0xff]  ;;  %v253_v17 = vld [vmem:[%s1755_s22 + $0x290] sm:$0xff] }
  0x2d   : > { %1273 = vmatmul.mubr.f32.vlgmr.msra.gmra.mxu0 %v172_v18  ;;  %1348 = vmatmul.mubr.f32.vlgmr.msra.gmra.mxu1 %v222_v19  ;;  %v204_v18 = vld [vmem:[%s1755_s22 + $0x108] sm:$0xff]  ;;  %v254_v19 = vld [vmem:[%s1755_s22 + $0x298] sm:$0xff] }
  0x2e   : > { %1275 = vmatprep.mubr.f32.mxu0 %v173_v20  ;;  %1350 = vmatprep.mubr.f32.mxu1 %v223_v21  ;;  %v205_v20 = vld [vmem:[%s1755_s22 + $0x110] sm:$0xff]  ;;  %v255_v21 = vld [vmem:[%s1755_s22 + $0x2a0] sm:$0xff] }
  0x31   : > { %1276 = vmatmul.mubr.f32.gmra.mxu0 %v174_v22  ;;  %1351 = vmatmul.mubr.f32.gmra.mxu1 %v224_v23  ;;  %v206_v22 = vld [vmem:[%s1755_s22 + $0x118] sm:$0xff]  ;;  %v256_v23 = vld [vmem:[%s1755_s22 + $0x2a8] sm:$0xff] }
  0x32   : > { %1278 = vmatprep.mubr.f32.mxu0 %v175_v24  ;;  %1353 = vmatprep.mubr.f32.mxu1 %v225_v25  ;;  %v207_v24 = vld [vmem:[%s1755_s22 + $0x120] sm:$0xff]  ;;  %v257_v25 = vld [vmem:[%s1755_s22 + $0x2b0] sm:$0xff] }
  0x35   : > { %1279 = vmatmul.mubr.f32.gmra.mxu0 %v176_v26  ;;  %1354 = vmatmul.mubr.f32.gmra.mxu1 %v226_v27  ;;  %v208_v26 = vld [vmem:[%s1755_s22 + $0x128] sm:$0xff]  ;;  %v258_v27 = vld [vmem:[%s1755_s22 + $0x2b8] sm:$0xff] }
  0x36   : > { %1281 = vmatprep.mubr.f32.mxu0 %v177_v28  ;;  %1356 = vmatprep.mubr.f32.mxu1 %v227_v29  ;;  %v209_v28 = vld [vmem:[%s1755_s22 + $0x130] sm:$0xff]  ;;  %v259_v29 = vld [vmem:[%s1755_s22 + $0x2c0] sm:$0xff] }
  0x39   : > { %1282 = vmatmul.mubr.f32.gmra.mxu0 %v178_v30  ;;  %1357 = vmatmul.mubr.f32.gmra.mxu1 %v228_v31  ;;  %v210_v30 = vld [vmem:[%s1755_s22 + $0x138] sm:$0xff]  ;;  %v260_v31 = vld [vmem:[%s1755_s22 + $0x2c8] sm:$0xff] }
  0x3a   : > { %1284 = vmatprep.mubr.f32.mxu0 %v179_v32  ;;  %1359 = vmatprep.mubr.f32.mxu1 %v229_v33  ;;  %v211_v32 = vld [vmem:[%s1755_s22 + $0x140] sm:$0xff]  ;;  %v261_v33 = vld [vmem:[%s1755_s22 + $0x2d0] sm:$0xff] }
  0x3d   : > { %1285 = vmatmul.mubr.f32.gmra.mxu0 %v180_v34  ;;  %1360 = vmatmul.mubr.f32.gmra.mxu1 %v230_v35  ;;  %v212_v34 = vld [vmem:[%s1755_s22 + $0x148] sm:$0xff]  ;;  %v262_v35 = vld [vmem:[%s1755_s22 + $0x2d8] sm:$0xff] }
  0x3e   : > { %1287 = vmatprep.mubr.f32.mxu0 %v181_v36  ;;  %1362 = vmatprep.mubr.f32.mxu1 %v231_v37  ;;  %v213_v36 = vld [vmem:[%s1755_s22 + $0x150] sm:$0xff]  ;;  %v263_v37 = vld [vmem:[%s1755_s22 + $0x2e0] sm:$0xff] }
  0x41   : > { %1288 = vmatmul.mubr.f32.gmra.mxu0 %v182_v38  ;;  %1363 = vmatmul.mubr.f32.gmra.mxu1 %v232_v39  ;;  %v214_v38 = vld [vmem:[%s1755_s22 + $0x158] sm:$0xff]  ;;  %v264_v39 = vld [vmem:[%s1755_s22 + $0x2e8] sm:$0xff] }
  0x42   : > { %1290 = vmatprep.mubr.f32.mxu0 %v183_v40  ;;  %1365 = vmatprep.mubr.f32.mxu1 %v233_v41  ;;  %v215_v40 = vld [vmem:[%s1755_s22 + $0x160] sm:$0xff]  ;;  %v265_v41 = vld [vmem:[%s1755_s22 + $0x2f0] sm:$0xff] }
  0x45   : > { %1291 = vmatmul.mubr.f32.gmra.mxu0 %v184_v42  ;;  %1366 = vmatmul.mubr.f32.gmra.mxu1 %v234_v43  ;;  %v216_v42 = vld [vmem:[%s1755_s22 + $0x168] sm:$0xff]  ;;  %v266_v43 = vld [vmem:[%s1755_s22 + $0x2f8] sm:$0xff] }
  0x46   : > { %1293 = vmatprep.mubr.f32.mxu0 %v185_v44  ;;  %1368 = vmatprep.mubr.f32.mxu1 %v235_v45  ;;  %v217_v44 = vld [vmem:[%s1755_s22 + $0x170] sm:$0xff]  ;;  %v267_v45 = vld [vmem:[%s1755_s22 + $0x300] sm:$0xff] }
  0x49   : > { %1294 = vmatmul.mubr.f32.gmra.mxu0 %v186_v46  ;;  %1369 = vmatmul.mubr.f32.gmra.mxu1 %v236_v47  ;;  %v218_v46 = vld [vmem:[%s1755_s22 + $0x178] sm:$0xff]  ;;  %v268_v47 = vld [vmem:[%s1755_s22 + $0x308] sm:$0xff] }
  0x4a   : > { %1296 = vmatprep.mubr.f32.mxu0 %v187_v48  ;;  %1371 = vmatprep.mubr.f32.mxu1 %v237_v49  ;;  %v219_v48 = vld [vmem:[%s1755_s22 + $0x180] sm:$0xff]  ;;  %v269_v49 = vld [vmem:[%s1755_s22 + $0x310] sm:$0xff] }
  0x4d   : > { %1297 = vmatmul.mubr.f32.gmra.mxu0 %v188_v50  ;;  %1372 = vmatmul.mubr.f32.gmra.mxu1 %v238_v51  ;;  %v220_v50 = vld [vmem:[%s1755_s22 + $0x188] sm:$0xff]  ;;  %v270_v51 = vld [vmem:[%s1755_s22 + $0x318] sm:$0xff] }
  0x4e   : > { %1299 = vmatprep.mubr.f32.mxu0 %v189_v52  ;;  %1374 = vmatprep.mubr.f32.mxu1 %v239_v53  ;;  %v1863_v52 = vld [vmem:[%s2151_s2] ss:$0 sm:$0xff] }
  0x51   : > { %1300 = vmatmul.mubr.f32.gmra.mxu0 %v190_v54  ;;  %1375 = vmatmul.mubr.f32.gmra.mxu1 %v240_v55 }
  0x52   : > { %1302 = vmatprep.mubr.f32.mxu0 %v191_v56  ;;  %1377 = vmatprep.mubr.f32.mxu1 %v241_v57 }
  0x55   : > { %1303 = vmatmul.mubr.f32.gmra.mxu0 %v192_v58  ;;  %1378 = vmatmul.mubr.f32.gmra.mxu1 %v242_v59 }
  0x56   : > { %1305 = vmatprep.mubr.f32.mxu0 %v193_v60  ;;  %1380 = vmatprep.mubr.f32.mxu1 %v243_v61 }
  0x59   : > { %1306 = vmatmul.mubr.f32.gmra.mxu0 %v194_v62  ;;  %1381 = vmatmul.mubr.f32.gmra.mxu1 %v244_v63 }
  0x5a   : > { %1308 = vmatprep.mubr.f32.mxu0 %v195_v0  ;;  %1383 = vmatprep.mubr.f32.mxu1 %v245_v1 }
  0x5d   : > { %1309 = vmatmul.mubr.f32.gmra.mxu0 %v196_v2  ;;  %1384 = vmatmul.mubr.f32.gmra.mxu1 %v246_v3 }
  0x5e   : > { %1311 = vmatprep.mubr.f32.mxu0 %v197_v4  ;;  %1386 = vmatprep.mubr.f32.mxu1 %v247_v5 }
  0x61   : > { %1312 = vmatmul.mubr.f32.gmra.mxu0 %v198_v6  ;;  %1387 = vmatmul.mubr.f32.gmra.mxu1 %v248_v7 }
  0x62   : > { %1314 = vmatprep.mubr.f32.mxu0 %v199_v8  ;;  %1389 = vmatprep.mubr.f32.mxu1 %v249_v9 }
  0x65   : > { %1315 = vmatmul.mubr.f32.gmra.mxu0 %v200_v10  ;;  %1390 = vmatmul.mubr.f32.gmra.mxu1 %v250_v11 }
  0x66   : > { %1317 = vmatprep.mubr.f32.mxu0 %v201_v12  ;;  %1392 = vmatprep.mubr.f32.mxu1 %v251_v13 }
  0x69   : > { %1318 = vmatmul.mubr.f32.gmra.mxu0 %v202_v14  ;;  %1393 = vmatmul.mubr.f32.gmra.mxu1 %v252_v15 }
  0x6a   : > { %1320 = vmatprep.mubr.f32.mxu0 %v203_v16  ;;  %1395 = vmatprep.mubr.f32.mxu1 %v253_v17 }
  0x6d   : > { %1321 = vmatmul.mubr.f32.gmra.mxu0 %v204_v18  ;;  %1396 = vmatmul.mubr.f32.gmra.mxu1 %v254_v19 }
  0x6e   : > { %1323 = vmatprep.mubr.f32.mxu0 %v205_v20  ;;  %1398 = vmatprep.mubr.f32.mxu1 %v255_v21 }
  0x71   : > { %1324 = vmatmul.mubr.f32.gmra.mxu0 %v206_v22  ;;  %1399 = vmatmul.mubr.f32.gmra.mxu1 %v256_v23 }
  0x72   : > { %1326 = vmatprep.mubr.f32.mxu0 %v207_v24  ;;  %1401 = vmatprep.mubr.f32.mxu1 %v257_v25 }
  0x75   : > { %1327 = vmatmul.mubr.f32.gmra.mxu0 %v208_v26  ;;  %1402 = vmatmul.mubr.f32.gmra.mxu1 %v258_v27 }
  0x76   : > { %1329 = vmatprep.mubr.f32.mxu0 %v209_v28  ;;  %1404 = vmatprep.mubr.f32.mxu1 %v259_v29 }
  0x79   : > { %1330 = vmatmul.mubr.f32.gmra.mxu0 %v210_v30  ;;  %1405 = vmatmul.mubr.f32.gmra.mxu1 %v260_v31 }
  0x7a   : > { %1332 = vmatprep.mubr.f32.mxu0 %v211_v32  ;;  %1407 = vmatprep.mubr.f32.mxu1 %v261_v33 }
  0x7d   : > { %1333 = vmatmul.mubr.f32.gmra.mxu0 %v212_v34  ;;  %1408 = vmatmul.mubr.f32.gmra.mxu1 %v262_v35 }
  0x7e   : > { %1335 = vmatprep.mubr.f32.mxu0 %v213_v36  ;;  %1410 = vmatprep.mubr.f32.mxu1 %v263_v37 }
  0x81   : > { %1336 = vmatmul.mubr.f32.gmra.mxu0 %v214_v38  ;;  %1411 = vmatmul.mubr.f32.gmra.mxu1 %v264_v39 }
  0x82   : > { %1338 = vmatprep.mubr.f32.mxu0 %v215_v40  ;;  %1413 = vmatprep.mubr.f32.mxu1 %v265_v41 }
  0x85   : > { %1339 = vmatmul.mubr.f32.gmra.mxu0 %v216_v42  ;;  %1414 = vmatmul.mubr.f32.gmra.mxu1 %v266_v43 }
  0x86   : > { %1341 = vmatprep.mubr.f32.mxu0 %v217_v44  ;;  %1416 = vmatprep.mubr.f32.mxu1 %v267_v45 }
  0x89   : > { %1342 = vmatmul.mubr.f32.gmra.mxu0 %v218_v46  ;;  %1417 = vmatmul.mubr.f32.gmra.mxu1 %v268_v47 }
  0x8a   : > { %1344 = vmatprep.mubr.f32.mxu0 %v219_v48  ;;  %1419 = vmatprep.mubr.f32.mxu1 %v269_v49 }
  0x8d   : > { %1345 = vmatmul.mubr.f32.gmra.mxu0 %v220_v50  ;;  %1420 = vmatmul.mubr.f32.gmra.mxu1 %v270_v51 }
  0xed   : > { %v1274_v53 = vpop.f32.mrf.mxu0  ;;  %v1349_v54 = vpop.f32.mrf.mxu1 }
  0xee   : > { %v366_v55 = vadd.f32 %v1274_v53, %v1863_v52  ;;  %v616_v56 = vadd.f32 %v1349_v54, %v1863_v52 }
  0xef   : > { %v360_v57 = vpop.f32.mrf.mxu0  ;;  %v610_v58 = vpop.f32.mrf.mxu1 }
  0xf0   : > { %1464 = vtanh.f32 %v366_v55  ;;  %v361_v59 = vadd.f32 %v1863_v52, %v360_v57  ;;  %v611_v60 = vadd.f32 %v1863_v52, %v610_v58 }
  0xf1   : > { %1466 = vtanh.f32 %v616_v56  ;;  %v1277_v61 = vpop.f32.mrf.mxu0  ;;  %v1352_v62 = vpop.f32.mrf.mxu1 }
  0xf2   : > { %1468 = vtanh.f32 %v361_v59  ;;  %v376_v63 = vadd.f32 %v1277_v61, %v1863_v52  ;;  %v626_v0 = vadd.f32 %v1352_v62, %v1863_v52 }
  0xf3   : > { %1470 = vtanh.f32 %v611_v60  ;;  %v370_v1 = vpop.f32.mrf.mxu0  ;;  %v620_v2 = vpop.f32.mrf.mxu1 }
  0xf4   : > { %1472 = vtanh.f32 %v376_v63  ;;  %v371_v3 = vadd.f32 %v1863_v52, %v370_v1  ;;  %v621_v4 = vadd.f32 %v1863_v52, %v620_v2 }
  0xf5   : > { %1474 = vtanh.f32 %v626_v0  ;;  %v1280_v5 = vpop.f32.mrf.mxu0  ;;  %v1355_v6 = vpop.f32.mrf.mxu1 }
  0xf6   : > { %1476 = vtanh.f32 %v371_v3  ;;  %v386_v7 = vadd.f32 %v1280_v5, %v1863_v52  ;;  %v636_v8 = vadd.f32 %v1355_v6, %v1863_v52 }
  0xf7   : > { %1478 = vtanh.f32 %v621_v4  ;;  %v380_v9 = vpop.f32.mrf.mxu0  ;;  %v630_v10 = vpop.f32.mrf.mxu1 }
  0xf8   : > { %1480 = vtanh.f32 %v386_v7  ;;  %v381_v11 = vadd.f32 %v1863_v52, %v380_v9  ;;  %v631_v12 = vadd.f32 %v1863_v52, %v630_v10 }
  0xf9   : > { %1482 = vtanh.f32 %v636_v8  ;;  %v1283_v13 = vpop.f32.mrf.mxu0  ;;  %v1358_v14 = vpop.f32.mrf.mxu1 }
  0xfa   : > { %1484 = vtanh.f32 %v381_v11  ;;  %v396_v15 = vadd.f32 %v1283_v13, %v1863_v52  ;;  %v646_v16 = vadd.f32 %v1358_v14, %v1863_v52 }
  0xfb   : > { %1486 = vtanh.f32 %v631_v12  ;;  %v390_v17 = vpop.f32.mrf.mxu0  ;;  %v640_v18 = vpop.f32.mrf.mxu1 }
  0xfc   : > { %1488 = vtanh.f32 %v396_v15  ;;  %v391_v19 = vadd.f32 %v1863_v52, %v390_v17  ;;  %v641_v20 = vadd.f32 %v1863_v52, %v640_v18 }
  0xfd   : > { %v1881_v21 = vpop.eup %1464  ;;  %1490 = vtanh.f32 %v646_v16  ;;  %v1286_v22 = vpop.f32.mrf.mxu0 }
  0xfe   : > { %v1361_v23 = vpop.f32.mrf.mxu1  ;;  %v1883_v24 = vpop.eup %1466  ;;  %1492 = vtanh.f32 %v391_v19  ;;  %v406_v25 = vadd.f32 %v1286_v22, %v1863_v52 }
  0xff   : > { %v656_v26 = vadd.f32 %v1361_v23, %v1863_v52  ;;  %v1887_v27 = vpop.eup %1468  ;;  %1494 = vtanh.f32 %v641_v20  ;;  %v400_v28 = vpop.f32.mrf.mxu0 }
 0x100   : > { %v650_v29 = vpop.f32.mrf.mxu1  ;;  %v1889_v30 = vpop.eup %1470  ;;  %1496 = vtanh.f32 %v406_v25  ;;  %v401_v31 = vadd.f32 %v1863_v52, %v400_v28 }
 0x101   : > { %v651_v32 = vadd.f32 %v1863_v52, %v650_v29  ;;  %v1893_v33 = vpop.eup %1472  ;;  %1498 = vtanh.f32 %v656_v26  ;;  %v1289_v34 = vpop.f32.mrf.mxu0 }
 0x102   : > { %v1364_v35 = vpop.f32.mrf.mxu1  ;;  %v1895_v36 = vpop.eup %1474  ;;  %1500 = vtanh.f32 %v401_v31  ;;  %v416_v37 = vadd.f32 %v1289_v34, %v1863_v52 }
 0x103   : > { %v666_v38 = vadd.f32 %v1364_v35, %v1863_v52  ;;  %v1899_v39 = vpop.eup %1476  ;;  %1502 = vtanh.f32 %v651_v32  ;;  %v410_v40 = vpop.f32.mrf.mxu0 }
 0x104   : > { %v660_v41 = vpop.f32.mrf.mxu1  ;;  %v1901_v42 = vpop.eup %1478  ;;  %1504 = vtanh.f32 %v416_v37  ;;  %v411_v43 = vadd.f32 %v1863_v52, %v410_v40 }
 0x105   : > { %v661_v44 = vadd.f32 %v1863_v52, %v660_v41  ;;  %v1905_v45 = vpop.eup %1480  ;;  %1506 = vtanh.f32 %v666_v38  ;;  %v1292_v46 = vpop.f32.mrf.mxu0 }
 0x106   : > { %v1367_v47 = vpop.f32.mrf.mxu1  ;;  %v1907_v48 = vpop.eup %1482  ;;  %1508 = vtanh.f32 %v411_v43  ;;  %v426_v49 = vadd.f32 %v1292_v46, %v1863_v52 }
 0x107   : > { %v676_v50 = vadd.f32 %v1367_v47, %v1863_v52  ;;  %v1911_v51 = vpop.eup %1484  ;;  %1510 = vtanh.f32 %v661_v44  ;;  %v420_v53 = vpop.f32.mrf.mxu0 }
 0x108   : > { %v670_v54 = vpop.f32.mrf.mxu1  ;;  %v1913_v55 = vpop.eup %1486  ;;  %1512 = vtanh.f32 %v426_v49  ;;  %v421_v56 = vadd.f32 %v1863_v52, %v420_v53 }
 0x109   : > { %v671_v57 = vadd.f32 %v1863_v52, %v670_v54  ;;  %v1917_v58 = vpop.eup %1488  ;;  %1514 = vtanh.f32 %v676_v50  ;;  %v1295_v59 = vpop.f32.mrf.mxu0 }
 0x10a   : > { %v1370_v60 = vpop.f32.mrf.mxu1  ;;  %v1919_v61 = vpop.eup %1490  ;;  %1516 = vtanh.f32 %v421_v56  ;;  %v436_v62 = vadd.f32 %v1295_v59, %v1863_v52 }
 0x10b   : > { %v686_v63 = vadd.f32 %v1370_v60, %v1863_v52  ;;  %v1923_v0 = vpop.eup %1492  ;;  %1518 = vtanh.f32 %v671_v57  ;;  %v430_v1 = vpop.f32.mrf.mxu0 }
 0x10c   : > { %v680_v2 = vpop.f32.mrf.mxu1  ;;  %v1925_v3 = vpop.eup %1494  ;;  %1520 = vtanh.f32 %v436_v62  ;;  %v431_v4 = vadd.f32 %v1863_v52, %v430_v1 }
 0x10d   : > { %v681_v5 = vadd.f32 %v1863_v52, %v680_v2  ;;  %v1929_v6 = vpop.eup %1496  ;;  %1522 = vtanh.f32 %v686_v63  ;;  %v1298_v7 = vpop.f32.mrf.mxu0 }
 0x10e   : > { %v1373_v8 = vpop.f32.mrf.mxu1  ;;  %v1931_v9 = vpop.eup %1498  ;;  %1524 = vtanh.f32 %v431_v4  ;;  %v446_v10 = vadd.f32 %v1298_v7, %v1863_v52 }
 0x10f   : > { %v696_v11 = vadd.f32 %v1373_v8, %v1863_v52  ;;  %v1935_v12 = vpop.eup %1500  ;;  %1526 = vtanh.f32 %v681_v5  ;;  %v440_v13 = vpop.f32.mrf.mxu0 }
 0x110   : > { %v690_v14 = vpop.f32.mrf.mxu1  ;;  %v1937_v15 = vpop.eup %1502  ;;  %1528 = vtanh.f32 %v446_v10  ;;  %v441_v16 = vadd.f32 %v1863_v52, %v440_v13 }
 0x111   : > { %v691_v17 = vadd.f32 %v1863_v52, %v690_v14  ;;  %v1941_v18 = vpop.eup %1504  ;;  %1530 = vtanh.f32 %v696_v11  ;;  %v1301_v19 = vpop.f32.mrf.mxu0 }
 0x112   : > { %v1376_v20 = vpop.f32.mrf.mxu1  ;;  %v1943_v22 = vpop.eup %1506  ;;  %1532 = vtanh.f32 %v441_v16  ;;  %v456_v23 = vadd.f32 %v1301_v19, %v1863_v52 }
 0x113   : > { %v706_v25 = vadd.f32 %v1376_v20, %v1863_v52  ;;  %v1947_v26 = vpop.eup %1508  ;;  %1534 = vtanh.f32 %v691_v17  ;;  %v450_v28 = vpop.f32.mrf.mxu0 }
 0x114   : > { %v700_v29 = vpop.f32.mrf.mxu1  ;;  %v1949_v31 = vpop.eup %1510  ;;  %1536 = vtanh.f32 %v456_v23  ;;  %v451_v32 = vadd.f32 %v1863_v52, %v450_v28 }
 0x115   : > { %v701_v34 = vadd.f32 %v1863_v52, %v700_v29  ;;  %v1953_v35 = vpop.eup %1512  ;;  %1538 = vtanh.f32 %v706_v25  ;;  %v1304_v37 = vpop.f32.mrf.mxu0 }
 0x116   : > { %v1379_v38 = vpop.f32.mrf.mxu1  ;;  %v1955_v40 = vpop.eup %1514  ;;  %1540 = vtanh.f32 %v451_v32  ;;  %v466_v41 = vadd.f32 %v1304_v37, %v1863_v52 }
 0x117   : > { %v716_v43 = vadd.f32 %v1379_v38, %v1863_v52  ;;  %v1959_v44 = vpop.eup %1516  ;;  %1542 = vtanh.f32 %v701_v34  ;;  %v460_v46 = vpop.f32.mrf.mxu0 }
 0x118   : > { %v710_v47 = vpop.f32.mrf.mxu1  ;;  %v1961_v49 = vpop.eup %1518  ;;  %1544 = vtanh.f32 %v466_v41  ;;  %v461_v50 = vadd.f32 %v1863_v52, %v460_v46 }
 0x119   : > { %v711_v53 = vadd.f32 %v1863_v52, %v710_v47  ;;  %v1965_v54 = vpop.eup %1520  ;;  %1546 = vtanh.f32 %v716_v43  ;;  %v1307_v56 = vpop.f32.mrf.mxu0 }
 0x11a   : > { %v1382_v57 = vpop.f32.mrf.mxu1  ;;  %v1967_v59 = vpop.eup %1522  ;;  %1548 = vtanh.f32 %v461_v50  ;;  %v476_v60 = vadd.f32 %v1307_v56, %v1863_v52 }
 0x11b   : > { %v726_v62 = vadd.f32 %v1382_v57, %v1863_v52  ;;  %v1971_v63 = vpop.eup %1524  ;;  %1550 = vtanh.f32 %v711_v53  ;;  %v470_v1 = vpop.f32.mrf.mxu0 }
 0x11c   : > { %v720_v2 = vpop.f32.mrf.mxu1  ;;  %v1973_v4 = vpop.eup %1526  ;;  %1552 = vtanh.f32 %v476_v60  ;;  %v471_v5 = vadd.f32 %v1863_v52, %v470_v1 }
 0x11d   : > { %v721_v7 = vadd.f32 %v1863_v52, %v720_v2  ;;  %v1977_v8 = vpop.eup %1528  ;;  %1554 = vtanh.f32 %v726_v62  ;;  %v1310_v10 = vpop.f32.mrf.mxu0 }
 0x11e   : > { %v1385_v11 = vpop.f32.mrf.mxu1  ;;  %v1979_v13 = vpop.eup %1530  ;;  %1556 = vtanh.f32 %v471_v5  ;;  %v486_v14 = vadd.f32 %v1310_v10, %v1863_v52 }
 0x11f   : > { %v736_v16 = vadd.f32 %v1385_v11, %v1863_v52  ;;  %v1983_v17 = vpop.eup %1532  ;;  %1558 = vtanh.f32 %v721_v7  ;;  %v480_v19 = vpop.f32.mrf.mxu0 }
 0x120   : > { %v730_v20 = vpop.f32.mrf.mxu1  ;;  %v1985_v23 = vpop.eup %1534  ;;  %1560 = vtanh.f32 %v486_v14  ;;  %v481_v25 = vadd.f32 %v1863_v52, %v480_v19 }
 0x121   : > { %v731_v28 = vadd.f32 %v1863_v52, %v730_v20  ;;  %v1989_v29 = vpop.eup %1536  ;;  %1562 = vtanh.f32 %v736_v16  ;;  %v1313_v32 = vpop.f32.mrf.mxu0 }
 0x122   : > { %v1388_v34 = vpop.f32.mrf.mxu1  ;;  %v1991_v37 = vpop.eup %1538  ;;  %1564 = vtanh.f32 %v481_v25  ;;  %v496_v38 = vadd.f32 %v1313_v32, %v1863_v52 }
 0x123   : > { %v746_v41 = vadd.f32 %v1388_v34, %v1863_v52  ;;  %v1995_v43 = vpop.eup %1540  ;;  %1566 = vtanh.f32 %v731_v28  ;;  %v490_v46 = vpop.f32.mrf.mxu0 }
 0x124   : > { %v740_v47 = vpop.f32.mrf.mxu1  ;;  %v1997_v50 = vpop.eup %1542  ;;  %1568 = vtanh.f32 %v496_v38  ;;  %v491_v53 = vadd.f32 %v1863_v52, %v490_v46 }
 0x125   : > { %v741_v56 = vadd.f32 %v1863_v52, %v740_v47  ;;  %v2001_v57 = vpop.eup %1544  ;;  %1570 = vtanh.f32 %v746_v41  ;;  %v1316_v60 = vpop.f32.mrf.mxu0 }
 0x126   : > { %v1391_v62 = vpop.f32.mrf.mxu1  ;;  %v2003_v1 = vpop.eup %1546  ;;  %1572 = vtanh.f32 %v491_v53  ;;  %v506_v2 = vadd.f32 %v1316_v60, %v1863_v52 }
 0x127   : > { %v756_v5 = vadd.f32 %v1391_v62, %v1863_v52  ;;  %v2007_v7 = vpop.eup %1548  ;;  %1574 = vtanh.f32 %v741_v56  ;;  %v500_v10 = vpop.f32.mrf.mxu0 }
 0x128   : > { %v750_v11 = vpop.f32.mrf.mxu1  ;;  %v2009_v14 = vpop.eup %1550  ;;  %1576 = vtanh.f32 %v506_v2  ;;  %v501_v16 = vadd.f32 %v1863_v52, %v500_v10 }
 0x129   : > { %v751_v19 = vadd.f32 %v1863_v52, %v750_v11  ;;  %v2013_v20 = vpop.eup %1552  ;;  %1578 = vtanh.f32 %v756_v5  ;;  %v1319_v25 = vpop.f32.mrf.mxu0 }
 0x12a   : > { %2153 = vst [vmem:[#allocation2_spill] sm:$0xff] %v2013_v20  ;;  %v1394_v28 = vpop.f32.mrf.mxu1  ;;  %v2015_v32 = vpop.eup %1554  ;;  %1580 = vtanh.f32 %v501_v16  ;;  %v516_v34 = vadd.f32 %v1319_v25, %v1863_v52 }
 0x12b   : > { %2154 = vst [vmem:[#allocation3_spill] sm:$0xff] %v2015_v32  ;;  %v766_v38 = vadd.f32 %v1394_v28, %v1863_v52  ;;  %v2019_v41 = vpop.eup %1556  ;;  %1582 = vtanh.f32 %v751_v19  ;;  %v510_v46 = vpop.f32.mrf.mxu0 }
 0x12c   : > { %v760_v47 = vpop.f32.mrf.mxu1  ;;  %v2021_v53 = vpop.eup %1558  ;;  %1584 = vtanh.f32 %v516_v34  ;;  %v511_v56 = vadd.f32 %v1863_v52, %v510_v46 }
 0x12d   : > { %v761_v60 = vadd.f32 %v1863_v52, %v760_v47  ;;  %v1561_v62 = vpop.eup %1560  ;;  %1586 = vtanh.f32 %v766_v38  ;;  %v1322_v2 = vpop.f32.mrf.mxu0 }
 0x12e   : > { %v1397_v5 = vpop.f32.mrf.mxu1  ;;  %v1563_v10 = vpop.eup %1562  ;;  %v959_v11 = vmax.f32 %v1887_v27, %v1561_v62  ;;  %1588 = vtanh.f32 %v511_v56  ;;  %v526_v16 = vadd.f32 %v1322_v2, %v1863_v52 }
 0x12f   : > { %v776_v19 = vadd.f32 %v1397_v5, %v1863_v52  ;;  %v2029_v25 = vpop.eup %1564  ;;  %v984_v28 = vmax.f32 %v1889_v30, %v1563_v10  ;;  %1590 = vtanh.f32 %v761_v60  ;;  %v520_v34 = vpop.f32.mrf.mxu0 }
 0x130   : > { %v770_v46 = vpop.f32.mrf.mxu1  ;;  %v2032_v47 = vpop.eup %1566  ;;  %1592 = vtanh.f32 %v526_v16  ;;  %v521_v27 = vadd.f32 %v1863_v52, %v520_v34 }
 0x131   : > { %2155 = vst [vmem:[#allocation4_spill] sm:$0xff] %v2032_v47  ;;  %v771_v38 = vadd.f32 %v1863_v52, %v770_v46  ;;  %v1569_v56 = vpop.eup %1568  ;;  %v1009_v62 = vmax.f32 %v959_v11, %v984_v28  ;;  %1594 = vtanh.f32 %v776_v19  ;;  %v1325_v30 = vpop.f32.mrf.mxu0 }
 0x132   : > { %v1400_v60 = vpop.f32.mrf.mxu1  ;;  %v1571_v2 = vpop.eup %1570  ;;  %v961_v5 = vmax.f32 %v1899_v39, %v1569_v56  ;;  %1596 = vtanh.f32 %v521_v27  ;;  %v536_v10 = vadd.f32 %v1325_v30, %v1863_v52 }
 0x133   : > { %v786_v32 = vadd.f32 %v1400_v60, %v1863_v52  ;;  %v1573_v20 = vpop.eup %1572  ;;  %1034 = vst [vmem:[%s2037_s29] sm:$0xff] %v1009_v62  ;;  %v986_v16 = vmax.f32 %v1901_v42, %v1571_v2  ;;  %1598 = vtanh.f32 %v771_v38  ;;  %v530_v34 = vpop.f32.mrf.mxu0 }
 0x134   : > { %v780_v46 = vpop.f32.mrf.mxu1  ;;  %v1575_v47 = vpop.eup %1574  ;;  %v960_v11 = vmax.f32 %v1881_v21, %v1573_v20  ;;  %1600 = vtanh.f32 %v536_v10  ;;  %v531_v19 = vadd.f32 %v1863_v52, %v530_v34 }
 0x135   : > { %v781_v39 = vadd.f32 %v1863_v52, %v780_v46  ;;  %v1577_v28 = vpop.eup %1576  ;;  %v1011_v27 = vmax.f32 %v961_v5, %v986_v16  ;;  %v985_v56 = vmax.f32 %v1883_v24, %v1575_v47  ;;  %1602 = vtanh.f32 %v786_v32  ;;  %v1328_v62 = vpop.f32.mrf.mxu0 }
 0x136   : > { %v1403_v30 = vpop.f32.mrf.mxu1  ;;  %v1579_v42 = vpop.eup %1578  ;;  %v963_v38 = vmax.f32 %v1911_v51, %v1577_v28  ;;  %1604 = vtanh.f32 %v531_v19  ;;  %v546_v21 = vadd.f32 %v1328_v62, %v1863_v52 }
 0x137   : > { %v796_v20 = vadd.f32 %v1403_v30, %v1863_v52  ;;  %v1581_v60 = vpop.eup %1580  ;;  %1036 = vst [vmem:[%s2037_s29 + $0x10] sm:$0xff] %v1011_v27  ;;  %v1010_v2 = vmax.f32 %v960_v11, %v985_v56  ;;  %v988_v10 = vmax.f32 %v1913_v55, %v1579_v42  ;;  %1606 = vtanh.f32 %v781_v39  ;;  %v540_v5 = vpop.f32.mrf.mxu0 }
 0x138   : > { %v790_v24 = vpop.f32.mrf.mxu1  ;;  %v1583_v32 = vpop.eup %1582  ;;  %v962_v47 = vmax.f32 %v1893_v33, %v1581_v60  ;;  %1608 = vtanh.f32 %v546_v21  ;;  %v541_v51 = vadd.f32 %v1863_v52, %v540_v5 }
 0x139   : > { %v791_v16 = vadd.f32 %v1863_v52, %v790_v24  ;;  %v1585_v34 = vpop.eup %1584  ;;  %1035 = vst [vmem:[%s2037_s29 + $0x8] sm:$0xff] %v1010_v2  ;;  %v1013_v46 = vmax.f32 %v963_v38, %v988_v10  ;;  %v987_v19 = vmax.f32 %v1895_v36, %v1583_v32  ;;  %1610 = vtanh.f32 %v796_v20  ;;  %v1331_v11 = vpop.f32.mrf.mxu0 }
 0x13a   : > { %v1406_v55 = vpop.f32.mrf.mxu1  ;;  %v1587_v39 = vpop.eup %1586  ;;  %v965_v28 = vmax.f32 %v1923_v0, %v1585_v34  ;;  %1612 = vtanh.f32 %v541_v51  ;;  %v556_v33 = vadd.f32 %v1331_v11, %v1863_v52 }
 0x13b   : > { %v806_v27 = vadd.f32 %v1406_v55, %v1863_v52  ;;  %v1589_v56 = vpop.eup %1588  ;;  %1038 = vst [vmem:[%s2037_s29 + $0x20] sm:$0xff] %v1013_v46  ;;  %v1012_v62 = vmax.f32 %v962_v47, %v987_v19  ;;  %v990_v30 = vmax.f32 %v1925_v3, %v1587_v39  ;;  %1614 = vtanh.f32 %v791_v16  ;;  %v550_v42 = vpop.f32.mrf.mxu0 }
 0x13c   : > { %v800_v36 = vpop.f32.mrf.mxu1  ;;  %v1591_v38 = vpop.eup %1590  ;;  %v964_v21 = vmax.f32 %v1905_v45, %v1589_v56  ;;  %1616 = vtanh.f32 %v556_v33  ;;  %v551_v0 = vadd.f32 %v1863_v52, %v550_v42 }
 0x13d   : > { %v801_v20 = vadd.f32 %v1863_v52, %v800_v36  ;;  %v1593_v60 = vpop.eup %1592  ;;  %1037 = vst [vmem:[%s2037_s29 + $0x18] sm:$0xff] %v1012_v62  ;;  %v1015_v2 = vmax.f32 %v965_v28, %v990_v30  ;;  %v989_v10 = vmax.f32 %v1907_v48, %v1591_v38  ;;  %1618 = vtanh.f32 %v806_v27  ;;  %v1334_v5 = vpop.f32.mrf.mxu0 }
 0x13e   : > { %v1409_v3 = vpop.f32.mrf.mxu1  ;;  %v1595_v24 = vpop.eup %1594  ;;  %v967_v32 = vmax.f32 %v1935_v12, %v1593_v60  ;;  %1620 = vtanh.f32 %v551_v0  ;;  %v566_v45 = vadd.f32 %v1334_v5, %v1863_v52 }
 0x13f   : > { %v816_v47 = vadd.f32 %v1409_v3, %v1863_v52  ;;  %v1597_v51 = vpop.eup %1596  ;;  %1040 = vst [vmem:[%s2037_s29 + $0x30] sm:$0xff] %v1015_v2  ;;  %v1014_v16 = vmax.f32 %v964_v21, %v989_v10  ;;  %v992_v34 = vmax.f32 %v1937_v15, %v1595_v24  ;;  %1622 = vtanh.f32 %v801_v20  ;;  %v560_v46 = vpop.f32.mrf.mxu0 }
 0x140   : > { %v810_v48 = vpop.f32.mrf.mxu1  ;;  %v1599_v19 = vpop.eup %1598  ;;  %v966_v11 = vmax.f32 %v1917_v58, %v1597_v51  ;;  %1624 = vtanh.f32 %v566_v45  ;;  %v561_v12 = vadd.f32 %v1863_v52, %v560_v46 }
 0x141   : > { %v811_v55 = vadd.f32 %v1863_v52, %v810_v48  ;;  %v1601_v39 = vpop.eup %1600  ;;  %1039 = vst [vmem:[%s2037_s29 + $0x28] sm:$0xff] %v1014_v16  ;;  %v1017_v28 = vmax.f32 %v967_v32, %v992_v34  ;;  %v991_v33 = vmax.f32 %v1919_v61, %v1599_v19  ;;  %1626 = vtanh.f32 %v816_v47  ;;  %v1337_v27 = vpop.f32.mrf.mxu0 }
 0x142   : > { %v1412_v15 = vpop.f32.mrf.mxu1  ;;  %v1603_v56 = vpop.eup %1602  ;;  %v969_v62 = vmax.f32 %v1947_v26, %v1601_v39  ;;  %1628 = vtanh.f32 %v561_v12  ;;  %v576_v58 = vadd.f32 %v1337_v27, %v1863_v52 }
 0x143   : > { %v826_v30 = vadd.f32 %v1412_v15, %v1863_v52  ;;  %v1605_v42 = vpop.eup %1604  ;;  %1042 = vst [vmem:[%s2037_s29 + $0x40] sm:$0xff] %v1017_v28  ;;  %v1016_v36 = vmax.f32 %v966_v11, %v991_v33  ;;  %v994_v38 = vmax.f32 %v1949_v31, %v1603_v56  ;;  %1630 = vtanh.f32 %v811_v55  ;;  %v570_v21 = vpop.f32.mrf.mxu0 }
 0x144   : > { %v820_v61 = vpop.f32.mrf.mxu1  ;;  %v1607_v0 = vpop.eup %1606  ;;  %v968_v20 = vmax.f32 %v1929_v6, %v1605_v42  ;;  %1632 = vtanh.f32 %v576_v58  ;;  %v571_v26 = vadd.f32 %v1863_v52, %v570_v21 }
 0x145   : > { %v821_v60 = vadd.f32 %v1863_v52, %v820_v61  ;;  %v1609_v2 = vpop.eup %1608  ;;  %1041 = vst [vmem:[%s2037_s29 + $0x38] sm:$0xff] %v1016_v36  ;;  %v1019_v10 = vmax.f32 %v969_v62, %v994_v38  ;;  %v993_v5 = vmax.f32 %v1931_v9, %v1607_v0  ;;  %1634 = vtanh.f32 %v826_v30  ;;  %v1340_v3 = vpop.f32.mrf.mxu0 }
 0x146   : > { %v1415_v31 = vpop.f32.mrf.mxu1  ;;  %v1611_v24 = vpop.eup %1610  ;;  %v971_v32 = vmax.f32 %v1959_v44, %v1609_v2  ;;  %1636 = vtanh.f32 %v571_v26  ;;  %v586_v6 = vadd.f32 %v1340_v3, %v1863_v52 }
 0x147   : > { %v836_v45 = vadd.f32 %v1415_v31, %v1863_v52  ;;  %v1613_v47 = vpop.eup %1612  ;;  %1044 = vst [vmem:[%s2037_s29 + $0x50] sm:$0xff] %v1019_v10  ;;  %v1018_v51 = vmax.f32 %v968_v20, %v993_v5  ;;  %v996_v16 = vmax.f32 %v1961_v49, %v1611_v24  ;;  %1638 = vtanh.f32 %v821_v60  ;;  %v580_v34 = vpop.f32.mrf.mxu0 }
 0x148   : > { %v830_v9 = vpop.f32.mrf.mxu1  ;;  %v1615_v46 = vpop.eup %1614  ;;  %v970_v48 = vmax.f32 %v1941_v18, %v1613_v47  ;;  %1640 = vtanh.f32 %v586_v6  ;;  %v581_v44 = vadd.f32 %v1863_v52, %v580_v34 }
 0x149   : > { %v831_v19 = vadd.f32 %v1863_v52, %v830_v9  ;;  %v1617_v11 = vpop.eup %1616  ;;  %1043 = vst [vmem:[%s2037_s29 + $0x48] sm:$0xff] %v1018_v51  ;;  %v1021_v12 = vmax.f32 %v971_v32, %v996_v16  ;;  %v995_v55 = vmax.f32 %v1943_v22, %v1615_v46  ;;  %1642 = vtanh.f32 %v836_v45  ;;  %v1343_v39 = vpop.f32.mrf.mxu0 }
 0x14a   : > { %v1418_v49 = vpop.f32.mrf.mxu1  ;;  %v1619_v28 = vpop.eup %1618  ;;  %v973_v33 = vmax.f32 %v1971_v63, %v1617_v11  ;;  %1644 = vtanh.f32 %v581_v44  ;;  %v596_v18 = vadd.f32 %v1343_v39, %v1863_v52 }
 0x14b   : > { %v846_v27 = vadd.f32 %v1418_v49, %v1863_v52  ;;  %v1621_v15 = vpop.eup %1620  ;;  %1046 = vst [vmem:[%s2037_s29 + $0x60] sm:$0xff] %v1021_v12  ;;  %v1020_v56 = vmax.f32 %v970_v48, %v995_v55  ;;  %v998_v62 = vmax.f32 %v1973_v4, %v1619_v28  ;;  %1646 = vtanh.f32 %v831_v19  ;;  %v590_v58 = vpop.f32.mrf.mxu0 }
 0x14c   : > { %v840_v22 = vpop.f32.mrf.mxu1  ;;  %v1623_v30 = vpop.eup %1622  ;;  %v972_v42 = vmax.f32 %v1953_v35, %v1621_v15  ;;  %1648 = vtanh.f32 %v596_v18  ;;  %v591_v63 = vadd.f32 %v1863_v52, %v590_v58 }
 0x14d   : > { %v841_v36 = vadd.f32 %v1863_v52, %v840_v22  ;;  %v1625_v38 = vpop.eup %1624  ;;  %1045 = vst [vmem:[%s2037_s29 + $0x58] sm:$0xff] %v1020_v56  ;;  %v1023_v21 = vmax.f32 %v973_v33, %v998_v62  ;;  %v997_v61 = vmax.f32 %v1955_v40, %v1623_v30  ;;  %1650 = vtanh.f32 %v846_v27  ;;  %v1346_v0 = vpop.f32.mrf.mxu0  ;;  %v2156_v22 = vld [vmem:[#allocation4_spill] sm:$0xff] }
 0x14e   : > { %v1421_v4 = vpop.f32.mrf.mxu1  ;;  %v1627_v20 = vpop.eup %1626  ;;  %v975_v26 = vmax.f32 %v1983_v17, %v1625_v38  ;;  %1652 = vtanh.f32 %v591_v63  ;;  %v606_v35 = vadd.f32 %v1346_v0, %v1863_v52 }
 0x14f   : > { %v856_v60 = vadd.f32 %v1421_v4, %v1863_v52  ;;  %v1629_v2 = vpop.eup %1628  ;;  %1048 = vst [vmem:[%s2037_s29 + $0x70] sm:$0xff] %v1023_v21  ;;  %v1022_v10 = vmax.f32 %v972_v42, %v997_v61  ;;  %v1000_v5 = vmax.f32 %v1985_v23, %v1627_v20  ;;  %1654 = vtanh.f32 %v841_v36  ;;  %v600_v3 = vpop.f32.mrf.mxu0  ;;  %v2158_v36 = vld [vmem:[#allocation3_spill] sm:$0xff] }
 0x150   : > { %v850_v40 = vpop.f32.mrf.mxu1  ;;  %v1631_v31 = vpop.eup %1630  ;;  %v974_v24 = vmax.f32 %v1965_v54, %v1629_v2  ;;  %1656 = vtanh.f32 %v606_v35  ;;  %v601_v17 = vadd.f32 %v1863_v52, %v600_v3 }
 0x151   : > { %v851_v32 = vadd.f32 %v1863_v52, %v850_v40  ;;  %v1633_v6 = vpop.eup %1632  ;;  %1047 = vst [vmem:[%s2037_s29 + $0x68] sm:$0xff] %v1022_v10  ;;  %v1025_v45 = vmax.f32 %v975_v26, %v1000_v5  ;;  %v999_v47 = vmax.f32 %v1967_v59, %v1631_v31  ;;  %1658 = vtanh.f32 %v856_v60 }
 0x152   : > { %v1635_v23 = vpop.eup %1634  ;;  %v977_v51 = vmax.f32 %v1995_v43, %v1633_v6  ;;  %1660 = vtanh.f32 %v601_v17 }
 0x153   : > { %v1637_v16 = vpop.eup %1636  ;;  %1050 = vst [vmem:[%s2037_s29 + $0x80] sm:$0xff] %v1025_v45  ;;  %v1024_v54 = vmax.f32 %v974_v24, %v999_v47  ;;  %v1002_v34 = vmax.f32 %v1997_v50, %v1635_v23  ;;  %1662 = vtanh.f32 %v851_v32 }
 0x154   : > { %v1639_v52 = vpop.eup %1638  ;;  %v976_v9 = vmax.f32 %v1977_v8, %v1637_v16 }
 0x155   : > { %v1641_v46 = vpop.eup %1640  ;;  %1049 = vst [vmem:[%s2037_s29 + $0x78] sm:$0xff] %v1024_v54  ;;  %v1027_v48 = vmax.f32 %v977_v51, %v1002_v34  ;;  %v1001_v59 = vmax.f32 %v1979_v13, %v1639_v52 }
 0x156   : > { %v1643_v44 = vpop.eup %1642  ;;  %v979_v43 = vmax.f32 %v2007_v7, %v1641_v46 }
 0x157   : > { %v1645_v19 = vpop.eup %1644  ;;  %1052 = vst [vmem:[%s2037_s29 + $0x90] sm:$0xff] %v1027_v48  ;;  %v1026_v11 = vmax.f32 %v976_v9, %v1001_v59  ;;  %v1004_v12 = vmax.f32 %v2009_v14, %v1643_v44 }
 0x158   : > { %v1647_v50 = vpop.eup %1646  ;;  %v978_v55 = vmax.f32 %v1989_v29, %v1645_v19 }
 0x159   : > { %v1649_v39 = vpop.eup %1648  ;;  %1051 = vst [vmem:[%s2037_s29 + $0x88] sm:$0xff] %v1026_v11  ;;  %v1029_v8 = vmax.f32 %v979_v43, %v1004_v12  ;;  %v1003_v49 = vmax.f32 %v1991_v37, %v1647_v50 }
 0x15a   : > { %v1651_v13 = vpop.eup %1650  ;;  %v981_v28 = vmax.f32 %v2019_v41, %v1649_v39 }
 0x15b   : > { %v1653_v33 = vpop.eup %1652  ;;  %1054 = vst [vmem:[%s2037_s29 + $0xa0] sm:$0xff] %v1029_v8  ;;  %v1028_v7 = vmax.f32 %v978_v55, %v1003_v49  ;;  %v1006_v18 = vmax.f32 %v2021_v53, %v1651_v13  ;;  %v2157_v53 = vld [vmem:[#allocation2_spill] sm:$0xff] }
 0x15c   : > { %v1655_v14 = vpop.eup %1654  ;;  %v980_v27 = vmax.f32 %v2001_v57, %v1653_v33 }
 0x15d   : > { %v1657_v29 = vpop.eup %1656  ;;  %1053 = vst [vmem:[%s2037_s29 + $0x98] sm:$0xff] %v1028_v7  ;;  %v1031_v15 = vmax.f32 %v981_v28, %v1006_v18  ;;  %v1005_v37 = vmax.f32 %v2003_v1, %v1655_v14 }
 0x15e   : > { %v1659_v56 = vpop.eup %1658  ;;  %v983_v62 = vmax.f32 %v2029_v25, %v1657_v29 }
 0x15f   : > { %v1661_v41 = vpop.eup %1660  ;;  %1056 = vst [vmem:[%s2037_s29 + $0xb0] sm:$0xff] %v1031_v15  ;;  %v1030_v58 = vmax.f32 %v980_v27, %v1005_v37  ;;  %v1008_v30 = vmax.f32 %v2156_v22, %v1659_v56 }
 0x160   : > { %v1663_v42 = vpop.eup %1662  ;;  %v982_v63 = vmax.f32 %v2157_v53, %v1661_v41 }
 0x161   : > { %1055 = vst [vmem:[%s2037_s29 + $0xa8] sm:$0xff] %v1030_v58  ;;  %v1033_v57 = vmax.f32 %v983_v62, %v1008_v30  ;;  %v1007_v38 = vmax.f32 %v2158_v36, %v1663_v42 }
 0x163   : > { %1058 = vst [vmem:[%s2037_s29 + $0xc0] sm:$0xff] %v1033_v57  ;;  %v1032_v21 = vmax.f32 %v982_v63, %v1007_v38 }
 0x165   : > { %1057 = vst [vmem:[%s2037_s29 + $0xb8] sm:$0xff] %v1032_v21 }
 0x166 PF: > { %s13_s12 = sadd.s32 1, %s1670_s12  }
 0x167   : > { %p10_p4 = scmp.ge.s32.totalorder %s13_s12, 4  }
 0x169   :  { %12 = sbr.rel (!%p10_p4) target bundleno = 1 (0x1), region = 62 }

// kernel: lenet5_forward.4
= control target key start
LH: loop header
LB: loop body
LE: loop exit
PB: predicated region body
PF: predicated region fallthrough
CT: control target
= control target key end

     0   :  { %s668_s12 = smov 0   ;;  %s844_s0 = inlined_call_operand.vmem [shape: f32[2,128,256], index: 0, kind: input, shape index: {}]   ;;  %s845_s1 = inlined_call_operand.vmem [shape: f32[256,128], index: 1, kind: input, shape index: {}]   ;;  %s846_s2 = inlined_call_operand.vmem [shape: f32[1,128], index: 2, kind: input, shape index: {}]   ;;  %s847_s3 = inlined_call_operand.vmem [shape: f32[2,32,128], index: 3, kind: output, shape index: {}]  }
   0x1 LB: > { %s474_s13 = sadd.s32 4294967295, %s646_s12   ;;  %p478_p0 = scmp.ge.s32.totalorder %s646_s12, 1  ;;  %s646_s12 = sphi %s668_s12, %s13_s12  }
   0x2   : > { %p137_p1 = scmp.lt.s32.totalorder %s646_s12, 3 }
   0x4   : > { %p138_p2 = pnand %p478_p0, %p137_p1 }
   0x5   : > { %p161_p3 = scmp.lt.s32.totalorder (!%p138_p2), %s474_s13, 1 }
   0x6   : > { %141 = sbr.rel (%p138_p2) target bundleno = 292 (0x124), region = 32 }
   0xb   : > { %v234_v0 = vld [vmem:[%s845_s1 + $0xf8] sm:$0xff]  ;;  %v233_v2 = vld [vmem:[%s845_s1 + $0xf0] sm:$0xff]  ;;  %v232_v4 = vld [vmem:[%s845_s1 + $0xe8] sm:$0xff]  ;;  %s849_s13 = smov (!%p161_p3, %s474_s13), 1 }
   0xc   : > { %v218_v1 = vld [vmem:[%s845_s1 + $0x78] sm:$0xff]  ;;  %488 = vmatprep.subr.mxu0 %v234_v0  ;;  %568 = vmatprep.subr.mxu1 %v234_v0  ;;  %v217_v3 = vld [vmem:[%s845_s1 + $0x70] sm:$0xff]  ;;  %v216_v5 = vld [vmem:[%s845_s1 + $0x68] sm:$0xff]  ;;  %s486_s18 = sshll.u32 %s849_s13, 8  ;;  %s487_s7 = sshll.u32 %s849_s13, 5 }
   0xd   : > { %489 = vmatpush3.msra.mxu0 %v218_v1  ;;  %584 = vmatpush3.msra.mxu1 %v218_v1  ;;  %v231_v6 = vld [vmem:[%s845_s1 + $0xe0] sm:$0xff]  ;;  %v230_v8 = vld [vmem:[%s845_s1 + $0xd8] sm:$0xff]  ;;  %v229_v10 = vld [vmem:[%s845_s1 + $0xd0] sm:$0xff]  ;;  %s776_s27 = scalar_lea.vmem %s844_s0, %s486_s18  ;;  %s170_s10 = scalar_lea.vmem %s847_s3, %s487_s7 }
   0xe   : > { %490 = vmatprep.subr.mxu0 %v233_v2  ;;  %569 = vmatprep.subr.mxu1 %v233_v2  ;;  %v215_v7 = vld [vmem:[%s845_s1 + $0x60] sm:$0xff]  ;;  %v214_v9 = vld [vmem:[%s845_s1 + $0x58] sm:$0xff]  ;;  %v213_v11 = vld [vmem:[%s845_s1 + $0x50] sm:$0xff] }
   0xf   : > { %491 = vmatpush3.msra.mxu0 %v217_v3  ;;  %585 = vmatpush3.msra.mxu1 %v217_v3  ;;  %v228_v12 = vld [vmem:[%s845_s1 + $0xc8] sm:$0xff]  ;;  %v227_v14 = vld [vmem:[%s845_s1 + $0xc0] sm:$0xff]  ;;  %v226_v16 = vld [vmem:[%s845_s1 + $0xb8] sm:$0xff] }
  0x10   : > { %492 = vmatprep.subr.mxu0 %v232_v4  ;;  %570 = vmatprep.subr.mxu1 %v232_v4  ;;  %v212_v13 = vld [vmem:[%s845_s1 + $0x48] sm:$0xff]  ;;  %v211_v15 = vld [vmem:[%s845_s1 + $0x40] sm:$0xff]  ;;  %v210_v17 = vld [vmem:[%s845_s1 + $0x38] sm:$0xff] }
  0x11   : > { %493 = vmatpush3.msra.mxu0 %v216_v5  ;;  %586 = vmatpush3.msra.mxu1 %v216_v5  ;;  %v225_v18 = vld [vmem:[%s845_s1 + $0xb0] sm:$0xff]  ;;  %v224_v20 = vld [vmem:[%s845_s1 + $0xa8] sm:$0xff]  ;;  %v223_v22 = vld [vmem:[%s845_s1 + $0xa0] sm:$0xff] }
  0x12   : > { %494 = vmatprep.subr.mxu0 %v231_v6  ;;  %571 = vmatprep.subr.mxu1 %v231_v6  ;;  %v209_v19 = vld [vmem:[%s845_s1 + $0x30] sm:$0xff]  ;;  %v208_v21 = vld [vmem:[%s845_s1 + $0x28] sm:$0xff]  ;;  %v207_v23 = vld [vmem:[%s845_s1 + $0x20] sm:$0xff] }
  0x13   : > { %495 = vmatpush3.msra.mxu0 %v215_v7  ;;  %587 = vmatpush3.msra.mxu1 %v215_v7  ;;  %v222_v24 = vld [vmem:[%s845_s1 + $0x98] sm:$0xff]  ;;  %v221_v26 = vld [vmem:[%s845_s1 + $0x90] sm:$0xff]  ;;  %v220_v28 = vld [vmem:[%s845_s1 + $0x88] sm:$0xff] }
  0x14   : > { %496 = vmatprep.subr.mxu0 %v230_v8  ;;  %572 = vmatprep.subr.mxu1 %v230_v8  ;;  %v206_v25 = vld [vmem:[%s845_s1 + $0x18] sm:$0xff]  ;;  %v205_v27 = vld [vmem:[%s845_s1 + $0x10] sm:$0xff]  ;;  %v204_v29 = vld [vmem:[%s845_s1 + $0x8] sm:$0xff] }
  0x15   : > { %497 = vmatpush3.msra.mxu0 %v214_v9  ;;  %588 = vmatpush3.msra.mxu1 %v214_v9  ;;  %v219_v30 = vld [vmem:[%s845_s1 + $0x80] sm:$0xff]  ;;  %v172_v32 = vld [vmem:[%s776_s27 + $0x8] sm:$0xff]  ;;  %v174_v36 = vld [vmem:[%s776_s27 + $0x18] sm:$0xff] }
  0x16   : > { %498 = vmatprep.subr.mxu0 %v229_v10  ;;  %573 = vmatprep.subr.mxu1 %v229_v10  ;;  %v203_v31 = vld [vmem:[%s845_s1] sm:$0xff]  ;;  %v188_v33 = vld [vmem:[%s776_s27 + $0x88] sm:$0xff]  ;;  %v190_v37 = vld [vmem:[%s776_s27 + $0x98] sm:$0xff] }
  0x17   : > { %499 = vmatpush3.msra.mxu0 %v213_v11  ;;  %589 = vmatpush3.msra.mxu1 %v213_v11  ;;  %v171_v34 = vld [vmem:[%s776_s27] sm:$0xff]  ;;  %v173_v38 = vld [vmem:[%s776_s27 + $0x10] sm:$0xff]  ;;  %v176_v40 = vld [vmem:[%s776_s27 + $0x28] sm:$0xff] }
  0x18   : > { %500 = vmatprep.subr.mxu0 %v228_v12  ;;  %574 = vmatprep.subr.mxu1 %v228_v12  ;;  %v187_v35 = vld [vmem:[%s776_s27 + $0x80] sm:$0xff]  ;;  %v189_v39 = vld [vmem:[%s776_s27 + $0x90] sm:$0xff]  ;;  %v192_v41 = vld [vmem:[%s776_s27 + $0xa8] sm:$0xff] }
  0x19   : > { %501 = vmatpush3.msra.mxu0 %v212_v13  ;;  %590 = vmatpush3.msra.mxu1 %v212_v13  ;;  %v175_v42 = vld [vmem:[%s776_s27 + $0x20] sm:$0xff]  ;;  %v178_v44 = vld [vmem:[%s776_s27 + $0x38] sm:$0xff]  ;;  %v177_v46 = vld [vmem:[%s776_s27 + $0x30] sm:$0xff] }
  0x1a   : > { %502 = vmatprep.subr.mxu0 %v227_v14  ;;  %575 = vmatprep.subr.mxu1 %v227_v14  ;;  %v191_v43 = vld [vmem:[%s776_s27 + $0xa0] sm:$0xff]  ;;  %v194_v45 = vld [vmem:[%s776_s27 + $0xb8] sm:$0xff]  ;;  %v193_v47 = vld [vmem:[%s776_s27 + $0xb0] sm:$0xff] }
  0x1b   : > { %503 = vmatpush3.msra.mxu0 %v211_v15  ;;  %591 = vmatpush3.msra.mxu1 %v211_v15  ;;  %v180_v48 = vld [vmem:[%s776_s27 + $0x48] sm:$0xff]  ;;  %v179_v50 = vld [vmem:[%s776_s27 + $0x40] sm:$0xff]  ;;  %v182_v52 = vld [vmem:[%s776_s27 + $0x58] sm:$0xff] }
  0x1c   : > { %504 = vmatprep.subr.mxu0 %v226_v16  ;;  %576 = vmatprep.subr.mxu1 %v226_v16  ;;  %v196_v49 = vld [vmem:[%s776_s27 + $0xc8] sm:$0xff]  ;;  %v195_v51 = vld [vmem:[%s776_s27 + $0xc0] sm:$0xff]  ;;  %v198_v53 = vld [vmem:[%s776_s27 + $0xd8] sm:$0xff] }
  0x1d   : > { %505 = vmatpush3.msra.mxu0 %v210_v17  ;;  %592 = vmatpush3.msra.mxu1 %v210_v17  ;;  %v181_v54 = vld [vmem:[%s776_s27 + $0x50] sm:$0xff]  ;;  %v184_v56 = vld [vmem:[%s776_s27 + $0x68] sm:$0xff]  ;;  %v183_v58 = vld [vmem:[%s776_s27 + $0x60] sm:$0xff] }
  0x1e   : > { %506 = vmatprep.subr.mxu0 %v225_v18  ;;  %577 = vmatprep.subr.mxu1 %v225_v18  ;;  %v197_v55 = vld [vmem:[%s776_s27 + $0xd0] sm:$0xff]  ;;  %v200_v57 = vld [vmem:[%s776_s27 + $0xe8] sm:$0xff]  ;;  %v199_v59 = vld [vmem:[%s776_s27 + $0xe0] sm:$0xff] }
  0x1f   : > { %507 = vmatpush3.msra.mxu0 %v209_v19  ;;  %593 = vmatpush3.msra.mxu1 %v209_v19  ;;  %v186_v60 = vld [vmem:[%s776_s27 + $0x78] sm:$0xff]  ;;  %v185_v62 = vld [vmem:[%s776_s27 + $0x70] sm:$0xff]  ;;  %v819_v15 = vld [vmem:[%s846_s2] ss:$0 sm:$0xff] }
  0x20   : > { %508 = vmatprep.subr.mxu0 %v224_v20  ;;  %578 = vmatprep.subr.mxu1 %v224_v20  ;;  %v202_v61 = vld [vmem:[%s776_s27 + $0xf8] sm:$0xff]  ;;  %v201_v63 = vld [vmem:[%s776_s27 + $0xf0] sm:$0xff] }
  0x21   : > { %509 = vmatpush3.msra.mxu0 %v208_v21  ;;  %594 = vmatpush3.msra.mxu1 %v208_v21 }
  0x22   : > { %510 = vmatprep.subr.mxu0 %v223_v22  ;;  %579 = vmatprep.subr.mxu1 %v223_v22 }
  0x23   : > { %511 = vmatpush3.msra.mxu0 %v207_v23  ;;  %595 = vmatpush3.msra.mxu1 %v207_v23 }
  0x24   : > { %512 = vmatprep.subr.mxu0 %v222_v24  ;;  %580 = vmatprep.subr.mxu1 %v222_v24 }
  0x25   : > { %513 = vmatpush3.msra.mxu0 %v206_v25  ;;  %596 = vmatpush3.msra.mxu1 %v206_v25 }
  0x26   : > { %514 = vmatprep.subr.mxu0 %v221_v26  ;;  %581 = vmatprep.subr.mxu1 %v221_v26 }
  0x27   : > { %515 = vmatpush3.msra.mxu0 %v205_v27  ;;  %597 = vmatpush3.msra.mxu1 %v205_v27 }
  0x28   : > { %516 = vmatprep.subr.mxu0 %v220_v28  ;;  %582 = vmatprep.subr.mxu1 %v220_v28 }
  0x29   : > { %517 = vmatpush3.msra.mxu0 %v204_v29  ;;  %598 = vmatpush3.msra.mxu1 %v204_v29 }
  0x2a   : > { %518 = vmatprep.subr.mxu0 %v219_v30  ;;  %583 = vmatprep.subr.mxu1 %v219_v30 }
  0x2b   : > { %519 = vmatpush3.msra.mxu0 %v203_v31  ;;  %599 = vmatpush3.msra.mxu1 %v203_v31 }
  0x2c   : > { %306 = vmatprep.mubr.f32.mxu0 %v172_v32  ;;  %346 = vmatprep.mubr.f32.mxu1 %v188_v33 }
  0x2d   : > { %307 = vmatmul.mubr.f32.vlgmr.msra.gmra.mxu0 %v171_v34  ;;  %347 = vmatmul.mubr.f32.vlgmr.msra.gmra.mxu1 %v187_v35 }
  0x2e   : > { %311 = vmatprep.mubr.f32.mxu0 %v174_v36  ;;  %351 = vmatprep.mubr.f32.mxu1 %v190_v37 }
  0x31   : > { %312 = vmatmul.mubr.f32.gmra.mxu0 %v173_v38  ;;  %352 = vmatmul.mubr.f32.gmra.mxu1 %v189_v39 }
  0x32   : > { %316 = vmatprep.mubr.f32.mxu0 %v176_v40  ;;  %356 = vmatprep.mubr.f32.mxu1 %v192_v41 }
  0x35   : > { %317 = vmatmul.mubr.f32.gmra.mxu0 %v175_v42  ;;  %357 = vmatmul.mubr.f32.gmra.mxu1 %v191_v43 }
  0x36   : > { %321 = vmatprep.mubr.f32.mxu0 %v178_v44  ;;  %361 = vmatprep.mubr.f32.mxu1 %v194_v45 }
  0x39   : > { %322 = vmatmul.mubr.f32.gmra.mxu0 %v177_v46  ;;  %362 = vmatmul.mubr.f32.gmra.mxu1 %v193_v47 }
  0x3a   : > { %326 = vmatprep.mubr.f32.mxu0 %v180_v48  ;;  %366 = vmatprep.mubr.f32.mxu1 %v196_v49 }
  0x3d   : > { %327 = vmatmul.mubr.f32.gmra.mxu0 %v179_v50  ;;  %367 = vmatmul.mubr.f32.gmra.mxu1 %v195_v51 }
  0x3e   : > { %331 = vmatprep.mubr.f32.mxu0 %v182_v52  ;;  %371 = vmatprep.mubr.f32.mxu1 %v198_v53 }
  0x41   : > { %332 = vmatmul.mubr.f32.gmra.mxu0 %v181_v54  ;;  %372 = vmatmul.mubr.f32.gmra.mxu1 %v197_v55 }
  0x42   : > { %336 = vmatprep.mubr.f32.mxu0 %v184_v56  ;;  %376 = vmatprep.mubr.f32.mxu1 %v200_v57 }
  0x45   : > { %337 = vmatmul.mubr.f32.gmra.mxu0 %v183_v58  ;;  %377 = vmatmul.mubr.f32.gmra.mxu1 %v199_v59 }
  0x46   : > { %341 = vmatprep.mubr.f32.mxu0 %v186_v60  ;;  %381 = vmatprep.mubr.f32.mxu1 %v202_v61 }
  0x49   : > { %342 = vmatmul.mubr.f32.gmra.mxu0 %v185_v62  ;;  %382 = vmatmul.mubr.f32.gmra.mxu1 %v201_v63 }
  0xed   : > { %v520_v0 = vpop.f32.mrf.mxu0  ;;  %v544_v1 = vpop.f32.mrf.mxu1 }
  0xef   : > { %v521_v2 = vpop.f32.mrf.mxu0  ;;  %v545_v3 = vpop.f32.mrf.mxu1 }
  0xf0   : > { %v522_v12 = vadd.f32 %v521_v2, %v520_v0  ;;  %v546_v16 = vadd.f32 %v545_v3, %v544_v1 }
  0xf1   : > { %v523_v4 = vpop.f32.mrf.mxu0  ;;  %v547_v5 = vpop.f32.mrf.mxu1 }
  0xf2   : > { %v309_v20 = vadd.f32 %v522_v12, %v819_v15  ;;  %v349_v23 = vadd.f32 %v546_v16, %v819_v15 }
  0xf3   : > { %v524_v6 = vpop.f32.mrf.mxu0  ;;  %v548_v7 = vpop.f32.mrf.mxu1 }
  0xf4   : > { %v525_v17 = vadd.f32 %v524_v6, %v523_v4  ;;  %v549_v25 = vadd.f32 %v548_v7, %v547_v5  ;;  %608 = vtanh.f32 %v309_v20 }
  0xf5   : > { %v526_v8 = vpop.f32.mrf.mxu0  ;;  %v550_v9 = vpop.f32.mrf.mxu1  ;;  %610 = vtanh.f32 %v349_v23 }
  0xf6   : > { %v314_v24 = vadd.f32 %v525_v17, %v819_v15  ;;  %v354_v35 = vadd.f32 %v549_v25, %v819_v15 }
  0xf7   : > { %v527_v10 = vpop.f32.mrf.mxu0  ;;  %v551_v11 = vpop.f32.mrf.mxu1 }
  0xf8   : > { %v528_v32 = vadd.f32 %v527_v10, %v526_v8  ;;  %612 = vtanh.f32 %v314_v24  ;;  %v552_v36 = vadd.f32 %v551_v11, %v550_v9 }
  0xf9   : > { %v529_v13 = vpop.f32.mrf.mxu0  ;;  %v553_v14 = vpop.f32.mrf.mxu1 }
  0xfa   : > { %v319_v43 = vadd.f32 %v528_v32, %v819_v15  ;;  %v359_v47 = vadd.f32 %v552_v36, %v819_v15 }
  0xfb   : > { %v530_v18 = vpop.f32.mrf.mxu0  ;;  %v554_v19 = vpop.f32.mrf.mxu1 }
  0xfc   : > { %v531_v44 = vadd.f32 %v530_v18, %v529_v13  ;;  %v555_v48 = vadd.f32 %v554_v19, %v553_v14 }
  0xfd   : > { %v532_v21 = vpop.f32.mrf.mxu0  ;;  %v556_v22 = vpop.f32.mrf.mxu1 }
  0xfe   : > { %v324_v55 = vadd.f32 %v531_v44, %v819_v15  ;;  %v364_v58 = vadd.f32 %v555_v48, %v819_v15 }
  0xff   : > { %v533_v26 = vpop.f32.mrf.mxu0  ;;  %v557_v27 = vpop.f32.mrf.mxu1 }
 0x100   : > { %v534_v28 = vadd.f32 %v533_v26, %v532_v21  ;;  %v558_v29 = vadd.f32 %v557_v27, %v556_v22 }
 0x101   : > { %v535_v30 = vpop.f32.mrf.mxu0  ;;  %v559_v31 = vpop.f32.mrf.mxu1 }
 0x102   : > { %v329_v33 = vadd.f32 %v534_v28, %v819_v15  ;;  %v369_v34 = vadd.f32 %v558_v29, %v819_v15  ;;  %v609_v63 = vpop.eup %608 }
 0x103   : > { %v536_v37 = vpop.f32.mrf.mxu0  ;;  %v560_v38 = vpop.f32.mrf.mxu1 }
 0x104   : > { %614 = vtanh.f32 %v329_v33  ;;  %v537_v39 = vadd.f32 %v536_v37, %v535_v30  ;;  %v561_v40 = vadd.f32 %v560_v38, %v559_v31  ;;  %v611_v2 = vpop.eup %610 }
 0x105   : > { %616 = vtanh.f32 %v369_v34  ;;  %v538_v41 = vpop.f32.mrf.mxu0  ;;  %v562_v42 = vpop.f32.mrf.mxu1 }
 0x106   : > { %v334_v45 = vadd.f32 %v537_v39, %v819_v15  ;;  %v374_v46 = vadd.f32 %v561_v40, %v819_v15  ;;  %618 = vtanh.f32 %v354_v35  ;;  %v613_v3 = vpop.eup %612 }
 0x107   : > { %v539_v49 = vpop.f32.mrf.mxu0  ;;  %v563_v50 = vpop.f32.mrf.mxu1 }
 0x108   : > { %620 = vtanh.f32 %v334_v45  ;;  %v540_v51 = vadd.f32 %v539_v49, %v538_v41  ;;  %v564_v52 = vadd.f32 %v563_v50, %v562_v42 }
 0x109   : > { %622 = vtanh.f32 %v374_v46  ;;  %v541_v53 = vpop.f32.mrf.mxu0  ;;  %v565_v54 = vpop.f32.mrf.mxu1 }
 0x10a   : > { %624 = vtanh.f32 %v319_v43  ;;  %v339_v56 = vadd.f32 %v540_v51, %v819_v15  ;;  %v379_v57 = vadd.f32 %v564_v52, %v819_v15 }
 0x10b   : > { %626 = vtanh.f32 %v359_v47  ;;  %v542_v59 = vpop.f32.mrf.mxu0  ;;  %v566_v60 = vpop.f32.mrf.mxu1 }
 0x10c   : > { %628 = vtanh.f32 %v339_v56  ;;  %v543_v61 = vadd.f32 %v542_v59, %v541_v53  ;;  %v567_v62 = vadd.f32 %v566_v60, %v565_v54 }
 0x10d   : > { %630 = vtanh.f32 %v379_v57 }
 0x10e   : > { %632 = vtanh.f32 %v324_v55  ;;  %v344_v0 = vadd.f32 %v543_v61, %v819_v15  ;;  %v384_v1 = vadd.f32 %v567_v62, %v819_v15 }
 0x10f   : > { %634 = vtanh.f32 %v364_v58 }
 0x110   : > { %636 = vtanh.f32 %v344_v0 }
 0x111   : > { %v615_v4 = vpop.eup %614  ;;  %638 = vtanh.f32 %v384_v1 }
 0x112   : > { %v617_v5 = vpop.eup %616  ;;  %v403_v6 = vmax.f32 %v609_v63, %v615_v4 }
 0x113   : > { %v407_v7 = vmax.f32 %v611_v2, %v617_v5  ;;  %v619_v8 = vpop.eup %618 }
 0x115   : > { %v621_v9 = vpop.eup %620  ;;  %v411_v10 = vmax.f32 %v403_v6, %v407_v7 }
 0x116   : > { %v623_v11 = vpop.eup %622  ;;  %v404_v12 = vmax.f32 %v613_v3, %v621_v9 }
 0x117   : > { %v625_v13 = vpop.eup %624  ;;  %415 = vst [vmem:[%s170_s10] sm:$0xff] %v411_v10  ;;  %v408_v14 = vmax.f32 %v619_v8, %v623_v11 }
 0x118   : > { %v627_v15 = vpop.eup %626 }
 0x119   : > { %v629_v16 = vpop.eup %628  ;;  %v412_v17 = vmax.f32 %v404_v12, %v408_v14 }
 0x11a   : > { %v631_v18 = vpop.eup %630  ;;  %v405_v19 = vmax.f32 %v625_v13, %v629_v16 }
 0x11b   : > { %v633_v20 = vpop.eup %632  ;;  %416 = vst [vmem:[%s170_s10 + $0x8] sm:$0xff] %v412_v17  ;;  %v409_v21 = vmax.f32 %v627_v15, %v631_v18 }
 0x11c   : > { %v635_v22 = vpop.eup %634 }
 0x11d   : > { %v637_v23 = vpop.eup %636  ;;  %v413_v24 = vmax.f32 %v405_v19, %v409_v21 }
 0x11e   : > { %v639_v25 = vpop.eup %638  ;;  %v406_v26 = vmax.f32 %v633_v20, %v637_v23 }
 0x11f   : > { %417 = vst [vmem:[%s170_s10 + $0x10] sm:$0xff] %v413_v24  ;;  %v410_v27 = vmax.f32 %v635_v22, %v639_v25 }
 0x121   : > { %v414_v28 = vmax.f32 %v406_v26, %v410_v27 }
 0x123   : > { %418 = vst [vmem:[%s170_s10 + $0x18] sm:$0xff] %v414_v28 }
 0x124 PF: > { %s13_s12 = sadd.s32 1, %s646_s12  }
 0x125   : > { %p10_p4 = scmp.ge.s32.totalorder %s13_s12, 4  }
 0x127   :  { %12 = sbr.rel (!%p10_p4) target bundleno = 1 (0x1), region = 62 }

// kernel: lenet5_forward.5
= control target key start
LH: loop header
LB: loop body
LE: loop exit
PB: predicated region body
PF: predicated region fallthrough
CT: control target
= control target key end

     0   :  { %vm618_vm0 = vmmov 0   ;;  %s1005_s1 = inlined_call_operand.vmem [shape: f32[512,128], index: 1, kind: input, shape index: {}]   ;;  %s1006_s0 = inlined_call_operand.vmem [shape: f32[8,512], index: 0, kind: input, shape index: {}]   ;;  %s1007_s3 = inlined_call_operand.vmem [shape: f32[128,128], index: 3, kind: input, shape index: {}]   ;;  %s1008_s5 = inlined_call_operand.vmem [shape: f32[128,128], index: 5, kind: input, shape index: {}]   ;;  %s1009_s2 = inlined_call_operand.vmem [shape: f32[1,128], index: 2, kind: input, shape index: {}]   ;;  %s1010_s4 = inlined_call_operand.vmem [shape: f32[1,128], index: 4, kind: input, shape index: {}]   ;;  %s1011_s6 = inlined_call_operand.vmem [shape: f32[1,128], index: 6, kind: input, shape index: {}]   ;;  %s1012_s7 = inlined_call_operand.vmem [shape: f32[8,128], index: 7, kind: output, shape index: {}]  }
   0x1   :  { %v61_v0 = vld [vmem:[%s1005_s1 + $0xf8] sm:$0xff]  ;;  %v60_v4 = vld [vmem:[%s1005_s1 + $0xf0] sm:$0xff]  ;;  %v59_v8 = vld [vmem:[%s1005_s1 + $0xe8] sm:$0xff] }
   0x2   :  { %v93_v1 = vld [vmem:[%s1005_s1 + $0x1f8] sm:$0xff]  ;;  %437 = vmatprep.subr.mxu0 %v61_v0  ;;  %v92_v5 = vld [vmem:[%s1005_s1 + $0x1f0] sm:$0xff]  ;;  %v91_v9 = vld [vmem:[%s1005_s1 + $0x1e8] sm:$0xff] }
   0x3   :  { %v45_v2 = vld [vmem:[%s1005_s1 + $0x78] sm:$0xff]  ;;  %472 = vmatprep.subr.mxu1 %v93_v1  ;;  %v44_v6 = vld [vmem:[%s1005_s1 + $0x70] sm:$0xff]  ;;  %v43_v10 = vld [vmem:[%s1005_s1 + $0x68] sm:$0xff] }
   0x4   :  { %v77_v3 = vld [vmem:[%s1005_s1 + $0x178] sm:$0xff]  ;;  %438 = vmatpush3.msra.mxu0 %v45_v2  ;;  %v76_v7 = vld [vmem:[%s1005_s1 + $0x170] sm:$0xff]  ;;  %v75_v11 = vld [vmem:[%s1005_s1 + $0x168] sm:$0xff] }
   0x5   :  { %473 = vmatpush3.msra.mxu1 %v77_v3  ;;  %439 = vmatprep.subr.mxu0 %v60_v4  ;;  %v58_v12 = vld [vmem:[%s1005_s1 + $0xe0] sm:$0xff]  ;;  %v57_v16 = vld [vmem:[%s1005_s1 + $0xd8] sm:$0xff]  ;;  %v56_v20 = vld [vmem:[%s1005_s1 + $0xd0] sm:$0xff] }
   0x6   :  { %474 = vmatprep.subr.mxu1 %v92_v5  ;;  %440 = vmatpush3.msra.mxu0 %v44_v6  ;;  %v90_v13 = vld [vmem:[%s1005_s1 + $0x1e0] sm:$0xff]  ;;  %v89_v17 = vld [vmem:[%s1005_s1 + $0x1d8] sm:$0xff]  ;;  %v88_v21 = vld [vmem:[%s1005_s1 + $0x1d0] sm:$0xff]  ;;  %v617_v5 = vmov 0.0  }
   0x7   :  { %475 = vmatpush3.msra.mxu1 %v76_v7  ;;  %441 = vmatprep.subr.mxu0 %v59_v8  ;;  %v42_v14 = vld [vmem:[%s1005_s1 + $0x60] sm:$0xff]  ;;  %v41_v18 = vld [vmem:[%s1005_s1 + $0x58] sm:$0xff]  ;;  %v40_v22 = vld [vmem:[%s1005_s1 + $0x50] sm:$0xff] }
   0x8   :  { %476 = vmatprep.subr.mxu1 %v91_v9  ;;  %v74_v15 = vld [vmem:[%s1005_s1 + $0x160] sm:$0xff]  ;;  %442 = vmatpush3.msra.mxu0 %v43_v10  ;;  %v73_v19 = vld [vmem:[%s1005_s1 + $0x158] sm:$0xff]  ;;  %v72_v23 = vld [vmem:[%s1005_s1 + $0x150] sm:$0xff] }
   0x9   :  { %477 = vmatpush3.msra.mxu1 %v75_v11  ;;  %443 = vmatprep.subr.mxu0 %v58_v12  ;;  %v55_v24 = vld [vmem:[%s1005_s1 + $0xc8] sm:$0xff]  ;;  %v54_v28 = vld [vmem:[%s1005_s1 + $0xc0] sm:$0xff]  ;;  %v53_v32 = vld [vmem:[%s1005_s1 + $0xb8] sm:$0xff] }
   0xa   :  { %478 = vmatprep.subr.mxu1 %v90_v13  ;;  %444 = vmatpush3.msra.mxu0 %v42_v14  ;;  %v87_v25 = vld [vmem:[%s1005_s1 + $0x1c8] sm:$0xff]  ;;  %v86_v29 = vld [vmem:[%s1005_s1 + $0x1c0] sm:$0xff]  ;;  %v85_v33 = vld [vmem:[%s1005_s1 + $0x1b8] sm:$0xff] }
   0xb   :  { %479 = vmatpush3.msra.mxu1 %v74_v15  ;;  %445 = vmatprep.subr.mxu0 %v57_v16  ;;  %v39_v26 = vld [vmem:[%s1005_s1 + $0x48] sm:$0xff]  ;;  %v38_v30 = vld [vmem:[%s1005_s1 + $0x40] sm:$0xff]  ;;  %v37_v34 = vld [vmem:[%s1005_s1 + $0x38] sm:$0xff] }
   0xc   :  { %480 = vmatprep.subr.mxu1 %v89_v17  ;;  %446 = vmatpush3.msra.mxu0 %v41_v18  ;;  %v71_v27 = vld [vmem:[%s1005_s1 + $0x148] sm:$0xff]  ;;  %v70_v31 = vld [vmem:[%s1005_s1 + $0x140] sm:$0xff]  ;;  %v69_v35 = vld [vmem:[%s1005_s1 + $0x138] sm:$0xff] }
   0xd   :  { %481 = vmatpush3.msra.mxu1 %v73_v19  ;;  %447 = vmatprep.subr.mxu0 %v56_v20  ;;  %v52_v36 = vld [vmem:[%s1005_s1 + $0xb0] sm:$0xff]  ;;  %v51_v40 = vld [vmem:[%s1005_s1 + $0xa8] sm:$0xff]  ;;  %v50_v44 = vld [vmem:[%s1005_s1 + $0xa0] sm:$0xff] }
   0xe   :  { %482 = vmatprep.subr.mxu1 %v88_v21  ;;  %448 = vmatpush3.msra.mxu0 %v40_v22  ;;  %v84_v37 = vld [vmem:[%s1005_s1 + $0x1b0] sm:$0xff]  ;;  %v83_v41 = vld [vmem:[%s1005_s1 + $0x1a8] sm:$0xff]  ;;  %v82_v45 = vld [vmem:[%s1005_s1 + $0x1a0] sm:$0xff] }
   0xf   :  { %483 = vmatpush3.msra.mxu1 %v72_v23  ;;  %449 = vmatprep.subr.mxu0 %v55_v24  ;;  %v36_v38 = vld [vmem:[%s1005_s1 + $0x30] sm:$0xff]  ;;  %v35_v42 = vld [vmem:[%s1005_s1 + $0x28] sm:$0xff]  ;;  %v34_v46 = vld [vmem:[%s1005_s1 + $0x20] sm:$0xff] }
  0x10   :  { %484 = vmatprep.subr.mxu1 %v87_v25  ;;  %450 = vmatpush3.msra.mxu0 %v39_v26  ;;  %v68_v39 = vld [vmem:[%s1005_s1 + $0x130] sm:$0xff]  ;;  %v67_v43 = vld [vmem:[%s1005_s1 + $0x128] sm:$0xff]  ;;  %v66_v47 = vld [vmem:[%s1005_s1 + $0x120] sm:$0xff] }
  0x11   :  { %485 = vmatpush3.msra.mxu1 %v71_v27  ;;  %451 = vmatprep.subr.mxu0 %v54_v28  ;;  %v49_v48 = vld [vmem:[%s1005_s1 + $0x98] sm:$0xff]  ;;  %v48_v52 = vld [vmem:[%s1005_s1 + $0x90] sm:$0xff]  ;;  %v47_v56 = vld [vmem:[%s1005_s1 + $0x88] sm:$0xff] }
  0x12   :  { %486 = vmatprep.subr.mxu1 %v86_v29  ;;  %452 = vmatpush3.msra.mxu0 %v38_v30  ;;  %v81_v49 = vld [vmem:[%s1005_s1 + $0x198] sm:$0xff]  ;;  %v80_v53 = vld [vmem:[%s1005_s1 + $0x190] sm:$0xff]  ;;  %v79_v57 = vld [vmem:[%s1005_s1 + $0x188] sm:$0xff] }
  0x13   :  { %487 = vmatpush3.msra.mxu1 %v70_v31  ;;  %453 = vmatprep.subr.mxu0 %v53_v32  ;;  %v33_v50 = vld [vmem:[%s1005_s1 + $0x18] sm:$0xff]  ;;  %v32_v54 = vld [vmem:[%s1005_s1 + $0x10] sm:$0xff]  ;;  %v31_v58 = vld [vmem:[%s1005_s1 + $0x8] sm:$0xff] }
  0x14   :  { %488 = vmatprep.subr.mxu1 %v85_v33  ;;  %454 = vmatpush3.msra.mxu0 %v37_v34  ;;  %v65_v51 = vld [vmem:[%s1005_s1 + $0x118] sm:$0xff]  ;;  %v64_v55 = vld [vmem:[%s1005_s1 + $0x110] sm:$0xff]  ;;  %v63_v59 = vld [vmem:[%s1005_s1 + $0x108] sm:$0xff] }
  0x15   :  { %489 = vmatpush3.msra.mxu1 %v69_v35  ;;  %455 = vmatprep.subr.mxu0 %v52_v36  ;;  %v46_v60 = vld [vmem:[%s1005_s1 + $0x80] sm:$0xff]  ;;  %v27_v63 = vld [vmem:[%s1006_s0 + $0x8] sm:$0xff]  ;;  %v29_v1 = vld [vmem:[%s1006_s0 + $0x18] sm:$0xff] }
  0x16   :  { %490 = vmatprep.subr.mxu1 %v84_v37  ;;  %456 = vmatpush3.msra.mxu0 %v36_v38  ;;  %v78_v61 = vld [vmem:[%s1005_s1 + $0x180] sm:$0xff]  ;;  %v28_v3 = vld [vmem:[%s1006_s0 + $0x10] sm:$0xff]  ;;  %v257_v4 = vld [vmem:[%s1007_s3 + $0x78] sm:$0xff] }
  0x17   :  { %491 = vmatpush3.msra.mxu1 %v68_v39  ;;  %457 = vmatprep.subr.mxu0 %v51_v40  ;;  %v30_v62 = vld [vmem:[%s1005_s1] sm:$0xff]  ;;  %v256_v6 = vld [vmem:[%s1007_s3 + $0x70] sm:$0xff]  ;;  %v255_v7 = vld [vmem:[%s1007_s3 + $0x68] sm:$0xff] }
  0x18   :  { %492 = vmatprep.subr.mxu1 %v83_v41  ;;  %458 = vmatpush3.msra.mxu0 %v35_v42  ;;  %v62_v0 = vld [vmem:[%s1005_s1 + $0x100] sm:$0xff]  ;;  %v253_v9 = vld [vmem:[%s1007_s3 + $0x58] sm:$0xff]  ;;  %v252_v10 = vld [vmem:[%s1007_s3 + $0x50] sm:$0xff] }
  0x19   :  { %493 = vmatpush3.msra.mxu1 %v67_v43  ;;  %459 = vmatprep.subr.mxu0 %v50_v44  ;;  %v26_v2 = vld [vmem:[%s1006_s0] sm:$0xff]  ;;  %v251_v11 = vld [vmem:[%s1007_s3 + $0x48] sm:$0xff]  ;;  %v249_v13 = vld [vmem:[%s1007_s3 + $0x38] sm:$0xff] }
  0x1a   :  { %494 = vmatprep.subr.mxu1 %v82_v45  ;;  %460 = vmatpush3.msra.mxu0 %v34_v46  ;;  %v254_v8 = vld [vmem:[%s1007_s3 + $0x60] sm:$0xff]  ;;  %v248_v14 = vld [vmem:[%s1007_s3 + $0x30] sm:$0xff]  ;;  %v247_v15 = vld [vmem:[%s1007_s3 + $0x28] sm:$0xff] }
  0x1b   :  { %495 = vmatpush3.msra.mxu1 %v66_v47  ;;  %461 = vmatprep.subr.mxu0 %v49_v48  ;;  %v250_v12 = vld [vmem:[%s1007_s3 + $0x40] sm:$0xff]  ;;  %v245_v17 = vld [vmem:[%s1007_s3 + $0x18] sm:$0xff]  ;;  %v244_v18 = vld [vmem:[%s1007_s3 + $0x10] sm:$0xff] }
  0x1c   :  { %496 = vmatprep.subr.mxu1 %v81_v49  ;;  %462 = vmatpush3.msra.mxu0 %v33_v50  ;;  %v246_v16 = vld [vmem:[%s1007_s3 + $0x20] sm:$0xff]  ;;  %v243_v19 = vld [vmem:[%s1007_s3 + $0x8] sm:$0xff]  ;;  %v351_v21 = vld [vmem:[%s1008_s5 + $0x78] sm:$0xff] }
  0x1d   :  { %497 = vmatpush3.msra.mxu1 %v65_v51  ;;  %463 = vmatprep.subr.mxu0 %v48_v52  ;;  %v242_v20 = vld [vmem:[%s1007_s3] sm:$0xff]  ;;  %v350_v22 = vld [vmem:[%s1008_s5 + $0x70] sm:$0xff]  ;;  %v349_v23 = vld [vmem:[%s1008_s5 + $0x68] sm:$0xff] }
  0x1e   :  { %498 = vmatprep.subr.mxu1 %v80_v53  ;;  %464 = vmatpush3.msra.mxu0 %v32_v54  ;;  %v348_v24 = vld [vmem:[%s1008_s5 + $0x60] sm:$0xff]  ;;  %v347_v25 = vld [vmem:[%s1008_s5 + $0x58] sm:$0xff]  ;;  %v346_v26 = vld [vmem:[%s1008_s5 + $0x50] sm:$0xff] }
  0x1f   :  { %499 = vmatpush3.msra.mxu1 %v64_v55  ;;  %465 = vmatprep.subr.mxu0 %v47_v56  ;;  %v345_v27 = vld [vmem:[%s1008_s5 + $0x48] sm:$0xff]  ;;  %v434_v30 = vld [vmem:[%s1009_s2] ss:$0 sm:$0xff]  ;;  %v343_v39 = vld [vmem:[%s1008_s5 + $0x38] sm:$0xff] }
  0x20   :  { %500 = vmatprep.subr.mxu1 %v79_v57  ;;  %466 = vmatpush3.msra.mxu0 %v31_v58  ;;  %v344_v38 = vld [vmem:[%s1008_s5 + $0x40] sm:$0xff]  ;;  %v342_v40 = vld [vmem:[%s1008_s5 + $0x30] sm:$0xff]  ;;  %v341_v41 = vld [vmem:[%s1008_s5 + $0x28] sm:$0xff] }
  0x21   :  { %501 = vmatpush3.msra.mxu1 %v63_v59  ;;  %467 = vmatprep.subr.mxu0 %v46_v60  ;;  %v340_v42 = vld [vmem:[%s1008_s5 + $0x20] sm:$0xff]  ;;  %v339_v43 = vld [vmem:[%s1008_s5 + $0x18] sm:$0xff]  ;;  %v338_v44 = vld [vmem:[%s1008_s5 + $0x10] sm:$0xff] }
  0x22   :  { %502 = vmatprep.subr.mxu1 %v78_v61  ;;  %468 = vmatpush3.msra.mxu0 %v30_v62  ;;  %v337_v45 = vld [vmem:[%s1008_s5 + $0x8] sm:$0xff]  ;;  %v336_v46 = vld [vmem:[%s1008_s5] sm:$0xff] }
  0x23   :  { %165 = vmatprep.mubr.f32.mxu0 %v27_v63  ;;  %503 = vmatpush3.msra.mxu1 %v62_v0  ;;  %v435_v47 = vld [vmem:[%s1010_s4] ss:$0 sm:$0xff] }
  0x24   :  { %235 = vmatprep.mubr.f32.mxu1 %v29_v1  ;;  %166 = vmatmul.mubr.f32.vlgmr.msra.gmra.mxu0 %v26_v2  ;;  %v436_v52 = vld [vmem:[%s1011_s6] ss:$0 sm:$0xff] }
  0x25   :  { %236 = vmatmul.mubr.f32.vlgmr.msra.gmra.mxu1 %v28_v3  ;;  %541 = vmatprep.subr.mxu0 %v617_v5 }
  0x26   :  { %576 = vmatprep.subr.mxu1 %v617_v5  ;;  %542 = vmatpush3.msra.mxu0 %v257_v4 }
  0x27   :  { %543 = vmatprep.subr.mxu0 %v617_v5  ;;  %573 = vmatprep.mubr.msk.f32.mxu0 %vm618_vm0, %v617_v5 }
  0x28   :  { %544 = vmatpush3.msra.mxu0 %v256_v6  ;;  %608 = vmatprep.mubr.msk.f32.mxu1 %vm618_vm0, %v617_v5 }
  0x29   :  { %545 = vmatprep.subr.mxu0 %v617_v5  ;;  %577 = vmatpush3.msra.mxu1 %v351_v21 }
  0x2a   :  { %546 = vmatpush3.msra.mxu0 %v255_v7  ;;  %578 = vmatprep.subr.mxu1 %v617_v5 }
  0x2b   :  { %547 = vmatprep.subr.mxu0 %v617_v5  ;;  %579 = vmatpush3.msra.mxu1 %v350_v22 }
  0x2c   :  { %548 = vmatpush3.msra.mxu0 %v254_v8  ;;  %580 = vmatprep.subr.mxu1 %v617_v5 }
  0x2d   :  { %549 = vmatprep.subr.mxu0 %v617_v5  ;;  %581 = vmatpush3.msra.mxu1 %v349_v23 }
  0x2e   :  { %550 = vmatpush3.msra.mxu0 %v253_v9  ;;  %582 = vmatprep.subr.mxu1 %v617_v5 }
  0x2f   :  { %551 = vmatprep.subr.mxu0 %v617_v5  ;;  %583 = vmatpush3.msra.mxu1 %v348_v24 }
  0x30   :  { %552 = vmatpush3.msra.mxu0 %v252_v10  ;;  %584 = vmatprep.subr.mxu1 %v617_v5 }
  0x31   :  { %553 = vmatprep.subr.mxu0 %v617_v5  ;;  %585 = vmatpush3.msra.mxu1 %v347_v25 }
  0x32   :  { %554 = vmatpush3.msra.mxu0 %v251_v11  ;;  %586 = vmatprep.subr.mxu1 %v617_v5 }
  0x33   :  { %555 = vmatprep.subr.mxu0 %v617_v5  ;;  %587 = vmatpush3.msra.mxu1 %v346_v26 }
  0x34   :  { %556 = vmatpush3.msra.mxu0 %v250_v12  ;;  %588 = vmatprep.subr.mxu1 %v617_v5 }
  0x35   :  { %557 = vmatprep.subr.mxu0 %v617_v5  ;;  %589 = vmatpush3.msra.mxu1 %v345_v27 }
  0x36   :  { %558 = vmatpush3.msra.mxu0 %v249_v13  ;;  %590 = vmatprep.subr.mxu1 %v617_v5 }
  0x37   :  { %559 = vmatprep.subr.mxu0 %v617_v5  ;;  %591 = vmatpush3.msra.mxu1 %v344_v38 }
  0x38   :  { %560 = vmatpush3.msra.mxu0 %v248_v14  ;;  %592 = vmatprep.subr.mxu1 %v617_v5 }
  0x39   :  { %561 = vmatprep.subr.mxu0 %v617_v5  ;;  %593 = vmatpush3.msra.mxu1 %v343_v39 }
  0x3a   :  { %562 = vmatpush3.msra.mxu0 %v247_v15  ;;  %594 = vmatprep.subr.mxu1 %v617_v5 }
  0x3b   :  { %563 = vmatprep.subr.mxu0 %v617_v5  ;;  %595 = vmatpush3.msra.mxu1 %v342_v40 }
  0x3c   :  { %564 = vmatpush3.msra.mxu0 %v246_v16  ;;  %596 = vmatprep.subr.mxu1 %v617_v5 }
  0x3d   :  { %565 = vmatprep.subr.mxu0 %v617_v5  ;;  %597 = vmatpush3.msra.mxu1 %v341_v41 }
  0x3e   :  { %566 = vmatpush3.msra.mxu0 %v245_v17  ;;  %598 = vmatprep.subr.mxu1 %v617_v5 }
  0x3f   :  { %567 = vmatprep.subr.mxu0 %v617_v5  ;;  %599 = vmatpush3.msra.mxu1 %v340_v42 }
  0x40   :  { %568 = vmatpush3.msra.mxu0 %v244_v18  ;;  %600 = vmatprep.subr.mxu1 %v617_v5 }
  0x41   :  { %569 = vmatprep.subr.mxu0 %v617_v5  ;;  %601 = vmatpush3.msra.mxu1 %v339_v43 }
  0x42   :  { %570 = vmatpush3.msra.mxu0 %v243_v19  ;;  %602 = vmatprep.subr.mxu1 %v617_v5 }
  0x43   :  { %571 = vmatprep.subr.mxu0 %v617_v5  ;;  %603 = vmatpush3.msra.mxu1 %v338_v44 }
  0x44   :  { %572 = vmatpush3.msra.mxu0 %v242_v20  ;;  %604 = vmatprep.subr.mxu1 %v617_v5 }
  0x45   :  { %605 = vmatpush3.msra.mxu1 %v337_v45 }
  0x46   :  { %606 = vmatprep.subr.mxu1 %v617_v5 }
  0x47   :  { %607 = vmatpush3.msra.mxu1 %v336_v46 }
  0xe4   :  { %v469_v28 = vpop.f32.mrf.mxu0 }
  0xe5   :  { %v504_v29 = vpop.f32.mrf.mxu1 }
  0xe6   :  { %v470_v31 = vpop.f32.mrf.mxu0 }
  0xe7   :  { %v505_v32 = vpop.f32.mrf.mxu1  ;;  %v471_v33 = vadd.f32 %v470_v31, %v469_v28 }
  0xe8   :  { %v506_v35 = vadd.f32 %v505_v32, %v504_v29 }
  0xe9   :  { %v168_v34 = vadd.f32 %v471_v33, %v434_v30 }
  0xeb   :  { %v238_v36 = vadd.f32 %v506_v35, %v168_v34 }
  0xed   :  { %613 = vtanh.f32 %v238_v36 }
  0xfa   :  { %v614_v37 = vpop.eup %613 }
  0xfb   :  { %574 = vmatmul.mubr.f32.vlgmr.msra.gmra.mxu0 %v614_v37 }
 0x1bb   :  { %v331_v48 = vpop.f32.mrf.mxu0 }
 0x1bc   :  { %v332_v49 = vadd.f32 %v435_v47, %v331_v48 }
 0x1bd   :  { %v575_v50 = vpop.f32.mrf.mxu0 }
 0x1be   :  { %615 = vtanh.f32 %v332_v49 }
 0x1cb   :  { %v616_v51 = vpop.eup %615 }
 0x1cc   :  { %609 = vmatmul.mubr.f32.vlgmr.msra.gmra.mxu1 %v616_v51 }
 0x28c   :  { %v425_v53 = vpop.f32.mrf.mxu1 }
 0x28d   :  { %v426_v54 = vadd.f32 %v436_v52, %v425_v53 }
 0x28e   :  { %v610_v55 = vpop.f32.mrf.mxu1 }
 0x28f   :  { %429 = vst [vmem:[%s1012_s7] sm:$0xff] %v426_v54 }

</bundles_post_ra>
